<compile_context>
chip_gen: v7x
topology: tpu7x:2x2x1
jax: 0.10.0
libtpu: 0.0.40
codegen_flags: <defaults>
</compile_context>

<pallas_src>
import functools

import jax
import jax.numpy as jnp
from jax.experimental import pallas as pl
from jax.experimental.pallas import tpu as pltpu


def _attention_kernel(z_ref, w1_ref, b1_ref, w2_ref, out_ref, beta_ref, *, mxu_dtype):
    # z_ref: (M, bn, D)   w1_ref: (D, H)   b1_ref: (1, H)   w2_ref: (1, H)
    # out_ref: (bn, D)    beta_ref: (M, 1, bn) f32
    M, bn, D = z_ref.shape

    # --- projection: Linear -> tanh (one MXU matmul for all M views) ---
    zf = z_ref[...].reshape(M * bn, D)                   # free merge of leading dims
    h = jnp.tanh(
        jnp.dot(zf.astype(mxu_dtype), w1_ref[...].astype(mxu_dtype),
                preferred_element_type=jnp.float32)
        + b1_ref[...].astype(jnp.float32)
    )                                                    # (M*bn, H) f32

    # --- Linear(hidden -> 1, no bias): VPU multiply + lane reduce (no N=1 matmul) ---
    s = jnp.sum(h * w2_ref[...].astype(jnp.float32), axis=-1, keepdims=True)
    s = s.reshape(M, bn, 1)                              # free split of leading dim

    # --- softmax over the views axis (leading dim, M small & static) ---
    s_max = jnp.max(s, axis=0, keepdims=True)            # (1, bn, 1)
    e = jnp.exp(s - s_max)                               # (M, bn, 1)
    denom = jnp.sum(e, axis=0, keepdims=True)            # (1, bn, 1)
    beta = e / denom                                     # (M, bn, 1) f32

    # --- weighted sum over views: slices straight from the VMEM ref ---
    acc = beta[0] * z_ref[0].astype(jnp.float32)         # (bn, D)
    for m in range(1, M):
        acc = acc + beta[m] * z_ref[m].astype(jnp.float32)

    out_ref[...] = acc.astype(out_ref.dtype)             # lane-dense (bn, D) store
    # tiny XLU transpose -> lane-dense beta store (no 1-lane masked stores)
    beta_ref[...] = jnp.swapaxes(beta, 1, 2).astype(beta_ref.dtype)   # (M, 1, bn)


def _pick_bn(N, bn_req):
    """Pick the batch block size.

    Prefers the largest multiple-of-128 divisor of N that is <= bn_req and
    leaves a grid of >= 2 steps (so the v7x megacore can shard the grid);
    falls back to a single full-batch block when N has no such divisor.
    """
    bn_req = min(max(bn_req, 128), N)
    single_block = None
    cand = (bn_req // 128) * 128
    while cand >= 128:
        if N % cand == 0:
            if N // cand >= 2:
                return cand
            single_block = cand          # cand == N; keep looking for a >=2-step split
        cand -= 128
    return single_block if single_block is not None else N


def attention_sfgcn_views_major(z_mnd, w1_t, b1_2d, w2_row, *, bn=2048, precise=False):
    """Views-major entry (recommended hot path).

    z_mnd: (M, N, D) views-major; w1_t: (D, H); b1_2d: (1, H); w2_row: (1, H).
    `bn` is a requested upper bound on the batch block size (see _pick_bn).
    precise=True keeps the first Linear's MXU operands in f32; the production
    default casts them to bf16 (accumulation stays f32).
    Returns (out (N, D) in z's dtype, beta (N, M, 1) in f32).
    """
    M, N, D = z_mnd.shape
    H = w1_t.shape[1]
    bn = _pick_bn(N, bn)
    assert N % bn == 0
    grid = (N // bn,)

    mxu_dtype = jnp.float32 if precise else jnp.bfloat16
    zsize = jnp.dtype(z_mnd.dtype).itemsize

    cost = pl.CostEstimate(
        flops=2 * N * M * D * H + 4 * N * M * H + 3 * N * M * D,
        transcendentals=N * M * (H + 1),
        bytes_accessed=(N * M * D * zsize          # z in
                        + N * D * zsize            # out
                        + N * M * 4                # beta (f32)
                        + (D * H + 2 * H) * 4),    # weights
    )

    # Double-buffered working set (+ sublane padding on beta) with headroom.
    vmem_bytes = 2 * (M * bn * D * zsize           # z block
                      + bn * D * zsize             # out block
                      + M * 8 * bn * 4)            # beta block (padded to 8 sublanes)
    vmem_limit = int(min(2 * vmem_bytes + (8 << 20), 64 << 20))

    out, beta_m1n = pl.pallas_call(
        functools.partial(_attention_kernel, mxu_dtype=mxu_dtype),
        out_shape=(
            jax.ShapeDtypeStruct((N, D), z_mnd.dtype),
            jax.ShapeDtypeStruct((M, 1, N), jnp.float32),
        ),
        grid=grid,
        in_specs=[
            pl.BlockSpec((M, bn, D), lambda i: (0, i, 0)),
            pl.BlockSpec((D, H), lambda i: (0, 0)),
            pl.BlockSpec((1, H), lambda i: (0, 0)),
            pl.BlockSpec((1, H), lambda i: (0, 0)),
        ],
        out_specs=(
            pl.BlockSpec((bn, D), lambda i: (i, 0)),
            pl.BlockSpec((M, 1, bn), lambda i: (0, 0, i)),
        ),
        compiler_params=pltpu.CompilerParams(
            dimension_semantics=("parallel",),
            vmem_limit_bytes=vmem_limit,
        ),
        cost_estimate=cost,
    )(z_mnd, w1_t, b1_2d, w2_row)

    beta = jnp.transpose(beta_m1n, (2, 0, 1))   # back to PyTorch (N, M, 1), f32
    return out, beta


def attention_sfgcn(z, w1, b1, w2, *, bn=2048, precise=False):
    """PyTorch-layout entry: z (N, M, D), w1 (H, D), b1 (H,), w2 (1, H).

    NOTE: the transpose below is layout plumbing that reads/writes all of z in
    HBM (more traffic than the kernel itself).  On the hot path, produce z
    views-major (M, N, D) upstream and call attention_sfgcn_views_major.
    """
    z_mnd = jnp.transpose(z, (1, 0, 2))
    return attention_sfgcn_views_major(
        z_mnd, w1.T, b1.reshape(1, -1), w2, bn=bn, precise=precise
    )


def attention_sfgcn_ref(z, w1, b1, w2):
    """Pure-JAX reference mirroring the PyTorch forward (z: (N, M, D), f32)."""
    h = jnp.tanh(jnp.einsum("nmd,hd->nmh", z, w1) + b1)
    w = jnp.einsum("nmh,oh->nmo", h, w2)                # (N, M, 1)
    beta = jax.nn.softmax(w, axis=1)
    return (beta * z).sum(axis=1), beta


if __name__ == "__main__":
    key = jax.random.PRNGKey(0)
    # Small shapes consistent with SFGCN: N rows, M=3 views (sAdj, fAdj, common),
    # in_size=128, hidden_size=16 (module default).  N=256 exercises a 2-step
    # grid (bn=128) so both v7x TensorCores get work.
    N, M, D, H = 256, 3, 128, 16

    kz, kw1, kb1, kw2 = jax.random.split(key, 4)
    z = jax.random.normal(kz, (N, M, D), dtype=jnp.float32)

    # PyTorch Linear parameter shapes: W1 (H, D), b1 (H,), W2 (1, H).
    w1 = jax.random.normal(kw1, (H, D), dtype=jnp.float32) * 0.1
    b1 = jax.random.normal(kb1, (H,), dtype=jnp.float32) * 0.1
    w2 = jax.random.normal(kw2, (1, H), dtype=jnp.float32) * 0.1

    out_ref, beta_ref = attention_sfgcn_ref(z, w1, b1, w2)

    # --- exact path: f32 z, f32 MXU operands (tight numerical check) ---
    out, beta = attention_sfgcn(z, w1, b1, w2, precise=True)
    out = jax.block_until_ready(out)
    beta = jax.block_until_ready(beta)
    assert out.shape == (N, D) and beta.shape == (N, M, 1)
    assert jnp.allclose(out, out_ref, atol=1e-5, rtol=1e-5)
    assert jnp.allclose(beta, beta_ref, atol=1e-5, rtol=1e-5)

    # --- production path: bf16 z + bf16 MXU operands, f32 softmax/accumulation ---
    out_bf, beta_bf = attention_sfgcn(z.astype(jnp.bfloat16), w1, b1, w2)
    out_bf = jax.block_until_ready(out_bf)
    beta_bf = jax.block_until_ready(beta_bf)
    assert out_bf.shape == (N, D) and out_bf.dtype == jnp.bfloat16
    assert beta_bf.shape == (N, M, 1) and beta_bf.dtype == jnp.float32
    assert jnp.allclose(out_bf.astype(jnp.float32), out_ref, atol=2e-1, rtol=1e-1)
    assert jnp.allclose(beta_bf, beta_ref, atol=5e-2, rtol=0.0)

    print("KERNEL_OK")
</pallas_src>

<mosaic_0001>
module attributes {stable_mosaic.version = 11 : i64} {
  func.func @_attention_kernel(%arg0: i32, %arg1: memref<3x128x128xf32, #tpu.memory_space<vmem>>, %arg2: memref<128x16xf32, #tpu.memory_space<vmem>>, %arg3: memref<1x16xf32, #tpu.memory_space<vmem>>, %arg4: memref<1x16xf32, #tpu.memory_space<vmem>>, %arg5: memref<128x128xf32, #tpu.memory_space<vmem>>, %arg6: memref<3x1x128xf32, #tpu.memory_space<vmem>>) attributes {dimension_semantics = [#tpu.dimension_semantics<parallel>], iteration_bounds = array<i64: 2>, scalar_prefetch = 0 : i64, scratch_operands = 0 : i64, tpu.core_type = #tpu.core_type<tc>, window_params = [{transform_indices = @transform_0, window_bounds = array<i64: 3, 128, 128>}, {pipeline_mode = #tpu.pipeline_mode<synchronous>, transform_indices = @transform_1, window_bounds = array<i64: 128, 16>}, {pipeline_mode = #tpu.pipeline_mode<synchronous>, transform_indices = @transform_2, window_bounds = array<i64: 1, 16>}, {pipeline_mode = #tpu.pipeline_mode<synchronous>, transform_indices = @transform_3, window_bounds = array<i64: 1, 16>}, {transform_indices = @transform_4, window_bounds = array<i64: 128, 128>}, {transform_indices = @transform_5, window_bounds = array<i64: 3, 1, 128>}]} {
    %c0 = arith.constant 0 : index
    %c0_0 = arith.constant 0 : index
    %c0_1 = arith.constant 0 : index
    %0 = vector.load %arg1[%c0, %c0_0, %c0_1] : memref<3x128x128xf32, #tpu.memory_space<vmem>>, vector<3x128x128xf32>
    %1 = vector.shape_cast %0 : vector<3x128x128xf32> to vector<384x128xf32>
    %c0_2 = arith.constant 0 : index
    %c0_3 = arith.constant 0 : index
    %2 = vector.load %arg2[%c0_2, %c0_3] : memref<128x16xf32, #tpu.memory_space<vmem>>, vector<128x16xf32>
    %cst = arith.constant dense<0.000000e+00> : vector<384x16xf32>
    %3 = tpu.matmul %1, %2, %cst {dimension_numbers = #tpu.dot_dimension_numbers<[1], [0], [0], [1], [0, 0, 1, 1], [], []>} : vector<384x128xf32>, vector<128x16xf32>, vector<384x16xf32> -> vector<384x16xf32>
    %c0_4 = arith.constant 0 : index
    %c0_5 = arith.constant 0 : index
    %4 = vector.load %arg3[%c0_4, %c0_5] : memref<1x16xf32, #tpu.memory_space<vmem>>, vector<1x16xf32>
    %5 = vector.broadcast %4 : vector<1x16xf32> to vector<384x16xf32>
    %6 = arith.addf %3, %5 : vector<384x16xf32>
    %7 = math.tanh %6 : vector<384x16xf32>
    %c0_6 = arith.constant 0 : index
    %c0_7 = arith.constant 0 : index
    %8 = vector.load %arg4[%c0_6, %c0_7] : memref<1x16xf32, #tpu.memory_space<vmem>>, vector<1x16xf32>
    %9 = vector.broadcast %8 : vector<1x16xf32> to vector<384x16xf32>
    %10 = arith.mulf %7, %9 : vector<384x16xf32>
    %cst_8 = arith.constant dense<0.000000e+00> : vector<384xf32>
    %11 = vector.multi_reduction <add>, %10, %cst_8 [1] : vector<384x16xf32> to vector<384xf32>
    %12 = vector.shape_cast %11 : vector<384xf32> to vector<384x1xf32>
    %13 = vector.shape_cast %12 : vector<384x1xf32> to vector<3x128x1xf32>
    %cst_9 = arith.constant dense<0xFF800000> : vector<128x1xf32>
    %14 = vector.multi_reduction <maximumf>, %13, %cst_9 [0] : vector<3x128x1xf32> to vector<128x1xf32>
    %15 = vector.shape_cast %14 : vector<128x1xf32> to vector<1x128x1xf32>
    %16 = vector.broadcast %15 : vector<1x128x1xf32> to vector<3x128x1xf32>
    %17 = arith.subf %13, %16 : vector<3x128x1xf32>
    %18 = math.exp %17 : vector<3x128x1xf32>
    %cst_10 = arith.constant dense<0.000000e+00> : vector<128x1xf32>
    %19 = vector.multi_reduction <add>, %18, %cst_10 [0] : vector<3x128x1xf32> to vector<128x1xf32>
    %20 = vector.shape_cast %19 : vector<128x1xf32> to vector<1x128x1xf32>
    %21 = vector.broadcast %20 : vector<1x128x1xf32> to vector<3x128x1xf32>
    %22 = arith.divf %18, %21 : vector<3x128x1xf32>
    %23 = vector.extract_strided_slice %22 {offsets = [0, 0, 0], sizes = [1, 128, 1], strides = [1, 1, 1]} : vector<3x128x1xf32> to vector<1x128x1xf32>
    %24 = vector.shape_cast %23 : vector<1x128x1xf32> to vector<128x1xf32>
    %c0_11 = arith.constant 0 : index
    %c0_12 = arith.constant 0 : index
    %c0_13 = arith.constant 0 : index
    %25 = vector.load %arg1[%c0_11, %c0_12, %c0_13] : memref<3x128x128xf32, #tpu.memory_space<vmem>>, vector<1x128x128xf32>
    %26 = vector.shape_cast %25 : vector<1x128x128xf32> to vector<128x128xf32>
    %27 = vector.broadcast %24 : vector<128x1xf32> to vector<128x128xf32>
    %28 = arith.mulf %27, %26 : vector<128x128xf32>
    %29 = vector.extract_strided_slice %22 {offsets = [1, 0, 0], sizes = [1, 128, 1], strides = [1, 1, 1]} : vector<3x128x1xf32> to vector<1x128x1xf32>
    %30 = vector.shape_cast %29 : vector<1x128x1xf32> to vector<128x1xf32>
    %c1 = arith.constant 1 : index
    %c0_14 = arith.constant 0 : index
    %c0_15 = arith.constant 0 : index
    %31 = vector.load %arg1[%c1, %c0_14, %c0_15] : memref<3x128x128xf32, #tpu.memory_space<vmem>>, vector<1x128x128xf32>
    %32 = vector.shape_cast %31 : vector<1x128x128xf32> to vector<128x128xf32>
    %33 = vector.broadcast %30 : vector<128x1xf32> to vector<128x128xf32>
    %34 = arith.mulf %33, %32 : vector<128x128xf32>
    %35 = arith.addf %28, %34 : vector<128x128xf32>
    %36 = vector.extract_strided_slice %22 {offsets = [2, 0, 0], sizes = [1, 128, 1], strides = [1, 1, 1]} : vector<3x128x1xf32> to vector<1x128x1xf32>
    %37 = vector.shape_cast %36 : vector<1x128x1xf32> to vector<128x1xf32>
    %c2 = arith.constant 2 : index
    %c0_16 = arith.constant 0 : index
    %c0_17 = arith.constant 0 : index
    %38 = vector.load %arg1[%c2, %c0_16, %c0_17] : memref<3x128x128xf32, #tpu.memory_space<vmem>>, vector<1x128x128xf32>
    %39 = vector.shape_cast %38 : vector<1x128x128xf32> to vector<128x128xf32>
    %40 = vector.broadcast %37 : vector<128x1xf32> to vector<128x128xf32>
    %41 = arith.mulf %40, %39 : vector<128x128xf32>
    %42 = arith.addf %35, %41 : vector<128x128xf32>
    %c0_18 = arith.constant 0 : index
    %c0_19 = arith.constant 0 : index
    %43 = vector.load %arg5[%c0_18, %c0_19] : memref<128x128xf32, #tpu.memory_space<vmem>>, vector<128x128xf32>
    tpu.vector_store %arg5[%c0_18, %c0_19], %42 {strides = array<i32>} : memref<128x128xf32, #tpu.memory_space<vmem>>, vector<128x128xf32>,
    %44 = tpu.transpose %22, [0, 2, 1] : vector<3x128x1xf32> -> vector<3x1x128xf32>
    %c0_20 = arith.constant 0 : index
    %c0_21 = arith.constant 0 : index
    %c0_22 = arith.constant 0 : index
    %45 = vector.load %arg6[%c0_20, %c0_21, %c0_22] : memref<3x1x128xf32, #tpu.memory_space<vmem>>, vector<3x1x128xf32>
    tpu.vector_store %arg6[%c0_20, %c0_21, %c0_22], %44 {strides = array<i32>} : memref<3x1x128xf32, #tpu.memory_space<vmem>>, vector<3x1x128xf32>,
    return
  }
  func.func @transform_0(%arg0: i32) -> (i32, i32, i32) {
    %c0_i32 = arith.constant 0 : i32
    %c0_i32_0 = arith.constant 0 : i32
    %c0_i32_1 = arith.constant 0 : i32
    return %c0_i32, %arg0, %c0_i32_0 : i32, i32, i32
  }
  func.func @transform_1(%arg0: i32) -> (i32, i32) {
    %c0_i32 = arith.constant 0 : i32
    %c0_i32_0 = arith.constant 0 : i32
    %c0_i32_1 = arith.constant 0 : i32
    return %c0_i32, %c0_i32_0 : i32, i32
  }
  func.func @transform_2(%arg0: i32) -> (i32, i32) {
    %c0_i32 = arith.constant 0 : i32
    %c0_i32_0 = arith.constant 0 : i32
    %c0_i32_1 = arith.constant 0 : i32
    return %c0_i32, %c0_i32_0 : i32, i32
  }
  func.func @transform_3(%arg0: i32) -> (i32, i32) {
    %c0_i32 = arith.constant 0 : i32
    %c0_i32_0 = arith.constant 0 : i32
    %c0_i32_1 = arith.constant 0 : i32
    return %c0_i32, %c0_i32_0 : i32, i32
  }
  func.func @transform_4(%arg0: i32) -> (i32, i32) {
    %c0_i32 = arith.constant 0 : i32
    %c0_i32_0 = arith.constant 0 : i32
    return %arg0, %c0_i32 : i32, i32
  }
  func.func @transform_5(%arg0: i32) -> (i32, i32, i32) {
    %c0_i32 = arith.constant 0 : i32
    %c0_i32_0 = arith.constant 0 : i32
    %c0_i32_1 = arith.constant 0 : i32
    return %c0_i32, %c0_i32_0, %arg0 : i32, i32, i32
  }
}

</mosaic_0001>

<bundles_post_ra>
// kernel: tpu_custom_call.1
= control target key start
LH: loop header
LB: loop body
LE: loop exit
PB: predicated region body
PF: predicated region fallthrough
CT: control target
= control target key end

     0   :  { %11 = vsyncpa [#allocation3], 0  ;;  %s3397_s0 = inlined_call_operand.hbm [shape: f32[3,256,128], index: 0, kind: input, shape index: {}]   ;;  %s3398_s1 = inlined_call_operand.vmem [shape: f32[128,16], index: 1, kind: input, shape index: {}]   ;;  %s3399_s2 = inlined_call_operand.vmem [shape: f32[1,16], index: 2, kind: input, shape index: {}]   ;;  %s3400_s3 = inlined_call_operand.vmem [shape: f32[1,16], index: 3, kind: input, shape index: {}]   ;;  %s3401_s4 = inlined_call_operand.hbm [shape: f32[256,128], index: 4, kind: output, shape index: {0}]   ;;  %s3402_s5 = inlined_call_operand.hbm [shape: f32[3,1,256], index: 5, kind: output, shape index: {1}]  }
   0x1   :  { %13 = vsyncpa [#allocation3 + $0x1], 0 }
   0x2   :  { %14 = vsyncpa [#allocation4], 0 }
   0x3   :  { %16 = vsyncpa [#allocation4 + $0x1], 0 }
   0x4   :  { %17 = vsyncpa [#allocation7], 0 }
   0x5   :  { %19 = vsyncpa [#allocation7 + $0x1], 0  ;;  %s2262_s18 = smov 0   ;;  %s2264_s19 = smov 0  }
   0x6   :  { %s2266_s20 = smov 0   ;;  %s2268_s21 = smov 0  }
   0x7 LB: > { %s2283_s22 = sadd.s32 4294967295, %s2217_s21   ;;  %s1561_s23 = sadd.s32 4294967294, %s2217_s21   ;;  %s2217_s21 = sphi %s2268_s21, %s3428_s21   ;;  %s2213_s20 = sphi %s2266_s20, %s3427_s20   ;;  %s2209_s19 = sphi %s2264_s19, %s3426_s19   ;;  %s2205_s18 = sphi %s2262_s18, %s3425_s18  }
   0x8   : > { %s2287_s24 = sadd.s32 1, %s2217_s21   ;;  %s32_s25 = sadd.s32 1, %s2213_s20 }
   0x9   : > { %s29_s26 = ssub.s32 %s2217_s21, %s2287_s24  ;;  %p39_p0 = scmp.ne.s32.totalorder %s2213_s20, %s2209_s19 }
   0xa   : > { %p30_p1 = scmp.eq.s32.totalorder %s29_s26, 0  ;;  %p40_p2 = scmp.eq.s32.totalorder %s2217_s21, 0 }
   0xb   : > { %p45_p3 = scmp.ne.s32.totalorder %s2209_s19, %s2205_s18  ;;  %p46_p4 = scmp.eq.s32.totalorder %s2283_s22, 0 }
   0xc   : > { %s2299_s27 = scalar_select %p30_p1, %s2213_s20, %s32_s25  }
   0xd   : > { %p2301_p5 = por %p40_p2, %p39_p0  ;;  %p2305_p6 = por %p46_p4, %p45_p3 }
   0xe   : > { %p132_p7 = scmp.eq.s32.totalorder %s2283_s22, 1  ;;  %p138_p8 = scmp.eq.s32.totalorder %s1561_s23, 1 }
   0xf   : > { %p1563_p11 = scmp.ge.s32.totalorder %s2217_s21, 2 }
  0x10   : > { %p2310_p9 = por %p132_p7, %p39_p0  ;;  %p2314_p10 = por %p138_p8, %p45_p3 }
  0x11   : > { %189 = sbr.rel (%p1563_p11) target bundleno = 38 (0x26), region = 28 }
  0x18   : > { %s193_s7 = sand.u32 1, %s2213_s20   ;;  %s1610_s9 = sshll.u32 %s2217_s21, 11 }
  0x19   : > { %s1828_s8 = smul.u32 384, %s193_s7  ;;  %s2219_s10 = smov 4096  }
  0x1a   : > { %1832 = sst [smem:[#allocation9]] (%p2301_p5), %s2219_s10  ;;  %s203_s14 = scalar_lea.hbm %s3397_s0, %s1610_s9 }
  0x1b   : > { %s1831_s11 = scalar_select %p2301_p5, [#allocation0], [#allocation10] }
  0x1c   : > { %s197_s16 = scalar_lea.vmem [#allocation2], %s1828_s8  ;;  %s2220_s23 = smov 2048  }
  0x1d   : > { %s208_s15 = sld [smem:[%s1831_s11]]   ;;  %s216_s17 = sshll.u32 %s197_s16, 4  ;;  %s217_s17 = int_to_ptr.vmem [resolvable:$true] %s216_s17 }
  0x1e   : > { %1833 = sst [smem:[#allocation9 + $0x1]] (%p2301_p5), %s2220_s23  ;;  %s2221_s25 = smov 16  }
  0x1f   : > { %1834 = sst [smem:[#allocation9 + $0x2]] (%p2301_p5), %s2221_s25  ;;  %s2222_s26 = smov 128  }
  0x20   : > { %1835 = sst [smem:[#allocation9 + $0x3]] (%p2301_p5), %s2222_s26  ;;  %s2223_s10 = smov 8  }
  0x21   : > { %1836 = sst [smem:[#allocation9 + $0x4]] (%p2301_p5), %s2222_s26  ;;  %s194_s8 = scalar_lea.sflag [#allocation3], %s193_s7 }
  0x22   : > { %1837 = sst [smem:[#allocation9 + $0x5]] (%p2301_p5), %s2223_s10  ;;  %s2224_s12 = smov [#allocation8]  }
  0x23   : > { %s1566_s9 = sshll.u32 %s208_s15, 26 }
  0x24   : > { %s1567_s11 = sadd.s32 134217728, %s1566_s9 }
  0x25   : > { %1838 = dma.general (%p2301_p5), %s203_s14, 6144, %s217_s17, %s194_s8, %s2224_s12, [#allocation9], %s1567_s11, 0  }
  0x26 PF: > { %p1568_p12 = scmp.ge.s32.totalorder %s2217_s21, 1  ;;  %p237_p13 = scmp.lt.s32.totalorder %s2217_s21, 3 }
  0x28   : > { %p238_p0 = pnand %p1568_p12, %p237_p13 }
  0x2a   : > { %241 = sbr.rel (%p238_p0) target bundleno = 797 (0x31d), region = 36 }
  0x31   : > { %s2345_s13 = sand.u32 1, %s2209_s19  }
  0x32   : > { %s1829_s16 = smul.u32 384, %s2345_s13  ;;  %s244_s15 = scalar_lea.sflag [#allocation3], %s2345_s13 }
  0x34   : > { %s2349_s23 = scalar_lea.vmem [#allocation2], %s1829_s16 }
  0x35   : > { %2192 = dma.done.wait (%p2305_p6), %s244_s15, 6144  }
  0x36   : > { %2194 = vsyncadd (%p2305_p6), %s244_s15, 4294961152  ;;  %v329_v0 = vld [vmem:[%s3398_s1] sm:$0xff]  ;;  %v330_v1 = vld [vmem:[%s3398_s1 + $0x8] sm:$0xff]  ;;  %vm760_vm0 = vcmask 130048   ;;  %s1569_s29 = sshll.u32 %s2345_s13, 7  ;;  %s1423_s28 = scalar_lea.sflag [#allocation4], %s2345_s13 }
  0x37   : > { %v331_v2 = vld [vmem:[%s3398_s1 + $0x10] sm:$0xff]  ;;  %v1780_v3 = vpack.c.bf16 %v330_v1, %v329_v0  ;;  %v332_v4 = vld [vmem:[%s3398_s1 + $0x18] sm:$0xff]  ;;  %v333_v6 = vld [vmem:[%s3398_s1 + $0x20] sm:$0xff]  ;;  %s3143_s11 = scalar_lea.vmem [#allocation5], %s1569_s29  ;;  %s2225_s14 = smov [#allocation5]  }
  0x38   : > { %v1784_v5 = vpack.c.bf16 %v332_v4, %v331_v2  ;;  %v334_v7 = vld [vmem:[%s3398_s1 + $0x28] sm:$0xff]  ;;  %v281_v9 = vld [vmem:[%s2349_s23] sm:$0xff]  ;;  %v335_v11 = vld [vmem:[%s3398_s1 + $0x30] sm:$0xff]  ;;  %s1441_s15 = sshll.u32 %s3143_s11, 4  ;;  %s2123_s17 = sshll.u32 %s2225_s14, 4  ;;  %s3305_s15 = int_to_ptr.vmem [resolvable:$true] %s1441_s15  ;;  %s2124_s17 = int_to_ptr.vmem [resolvable:$false] %s2123_s17 }
  0x39   : > { %1781 = vmatprep.subr.bf16.mxu0 %v1780_v3  ;;  %1812 = vmatprep.subr.bf16.mxu1 %v1780_v3  ;;  %v1788_v8 = vpack.c.bf16 %v334_v7, %v333_v6  ;;  %v305_v10 = vld [vmem:[%s2349_s23 + $0xc0] sm:$0xff]  ;;  %v336_v12 = vld [vmem:[%s3398_s1 + $0x38] sm:$0xff]  ;;  %v338_v15 = vld [vmem:[%s3398_s1 + $0x48] sm:$0xff]  ;;  %s2119_s7 = scalar_lea.vmem %s3305_s15, 2048  ;;  %s2125_s25 = scalar_lea.vmem %s2124_s17, 4096 }
  0x3a   : > { %1783 = vmatpush3.bf16.msra.mxu0 %v1780_v3  ;;  %1820 = vmatpush3.bf16.msra.mxu1 %v1780_v3  ;;  %v1792_v13 = vpack.c.bf16 %v336_v12, %v335_v11  ;;  %v337_v14 = vld [vmem:[%s3398_s1 + $0x40] sm:$0xff]  ;;  %v339_v17 = vld [vmem:[%s3398_s1 + $0x50] sm:$0xff]  ;;  %v340_v18 = vld [vmem:[%s3398_s1 + $0x58] sm:$0xff]  ;;  %p2120_p1 = scmp.ne.s32.totalorder %s3305_s15, %s2119_s7  ;;  %p2126_p4 = scmp.lt.s32.totalorder %s3305_s15, %s2124_s17 }
  0x3b   : > { %1785 = vmatprep.subr.bf16.mxu0 %v1784_v5  ;;  %1813 = vmatprep.subr.bf16.mxu1 %v1784_v5  ;;  %v1796_v16 = vpack.c.bf16 %v338_v15, %v337_v14  ;;  %v1800_v19 = vpack.c.bf16 %v340_v18, %v339_v17  ;;  %v341_v20 = vld [vmem:[%s3398_s1 + $0x60] sm:$0xff]  ;;  %v342_v21 = vld [vmem:[%s3398_s1 + $0x68] sm:$0xff]  ;;  %v343_v23 = vld [vmem:[%s3398_s1 + $0x70] sm:$0xff]  ;;  %p2127_p5 = scmp.lt.s32.totalorder %s2125_s25, %s2119_s7 }
  0x3c   : > { %1708 = vmatprep.mubr.f32.mxu0 %v281_v9  ;;  %1744 = vmatprep.mubr.f32.mxu1 %v305_v10  ;;  %v1804_v22 = vpack.c.bf16 %v342_v21, %v341_v20  ;;  %v344_v24 = vld [vmem:[%s3398_s1 + $0x78] sm:$0xff]  ;;  %v282_v26 = vld [vmem:[%s2349_s23 + $0x8] sm:$0xff]  ;;  %v283_v28 = vld [vmem:[%s2349_s23 + $0x10] sm:$0xff]  ;;  %p2121_p2 = pnand %p2120_p1, %p2310_p9 }
  0x3d   : > { %v1808_v25 = vpack.c.bf16 %v344_v24, %v343_v23  ;;  %v306_v27 = vld [vmem:[%s2349_s23 + $0xc8] sm:$0xff]  ;;  %v307_v29 = vld [vmem:[%s2349_s23 + $0xd0] sm:$0xff]  ;;  %v284_v30 = vld [vmem:[%s2349_s23 + $0x18] sm:$0xff]  ;;  %p2128_p6 = por %p2127_p5, %p2126_p4 }
  0x3e   : > { %1787 = vmatpush3.bf16.msra.mxu0 %v1784_v5  ;;  %1821 = vmatpush3.bf16.msra.mxu1 %v1784_v5  ;;  %v308_v31 = vld [vmem:[%s2349_s23 + $0xd8] sm:$0xff]  ;;  %v285_v32 = vld [vmem:[%s2349_s23 + $0x20] sm:$0xff]  ;;  %v286_v34 = vld [vmem:[%s2349_s23 + $0x28] sm:$0xff]  ;;  %p2122_p3 = pneg %p2121_p2 }
  0x3f   : > { %1789 = vmatprep.subr.bf16.mxu0 %v1788_v8  ;;  %1814 = vmatprep.subr.bf16.mxu1 %v1788_v8  ;;  %v309_v33 = vld [vmem:[%s2349_s23 + $0xe0] sm:$0xff]  ;;  %v310_v35 = vld [vmem:[%s2349_s23 + $0xe8] sm:$0xff]  ;;  %v287_v36 = vld [vmem:[%s2349_s23 + $0x30] sm:$0xff] }
  0x40   : > { %v311_v37 = vld [vmem:[%s2349_s23 + $0xf0] sm:$0xff]  ;;  %v288_v38 = vld [vmem:[%s2349_s23 + $0x38] sm:$0xff]  ;;  %v313_v40 = vld [vmem:[%s2349_s23 + $0x100] sm:$0xff]  ;;  %p2129_p7 = pnand %p2128_p6, %p2122_p3 }
  0x41   : > { %v312_v39 = vld [vmem:[%s2349_s23 + $0xf8] sm:$0xff]  ;;  %v289_v41 = vld [vmem:[%s2349_s23 + $0x40] sm:$0xff]  ;;  %v314_v42 = vld [vmem:[%s2349_s23 + $0x108] sm:$0xff] }
  0x42   : > { %1791 = vmatpush3.bf16.msra.mxu0 %v1788_v8  ;;  %1822 = vmatpush3.bf16.msra.mxu1 %v1788_v8  ;;  %v290_v43 = vld [vmem:[%s2349_s23 + $0x48] sm:$0xff]  ;;  %v315_v44 = vld [vmem:[%s2349_s23 + $0x110] sm:$0xff]  ;;  %v316_v46 = vld [vmem:[%s2349_s23 + $0x118] sm:$0xff] }
  0x43   : > { %1793 = vmatprep.subr.bf16.mxu0 %v1792_v13  ;;  %1815 = vmatprep.subr.bf16.mxu1 %v1792_v13  ;;  %v291_v45 = vld [vmem:[%s2349_s23 + $0x50] sm:$0xff]  ;;  %v292_v47 = vld [vmem:[%s2349_s23 + $0x58] sm:$0xff]  ;;  %v317_v48 = vld [vmem:[%s2349_s23 + $0x120] sm:$0xff] }
  0x44   : > { %v293_v49 = vld [vmem:[%s2349_s23 + $0x60] sm:$0xff]  ;;  %v318_v50 = vld [vmem:[%s2349_s23 + $0x128] sm:$0xff]  ;;  %v319_v52 = vld [vmem:[%s2349_s23 + $0x130] sm:$0xff] }
  0x45   : > { %v294_v51 = vld [vmem:[%s2349_s23 + $0x68] sm:$0xff]  ;;  %v295_v53 = vld [vmem:[%s2349_s23 + $0x70] sm:$0xff]  ;;  %v320_v54 = vld [vmem:[%s2349_s23 + $0x138] sm:$0xff] }
  0x46   : > { %1795 = vmatpush3.bf16.msra.mxu0 %v1792_v13  ;;  %1823 = vmatpush3.bf16.msra.mxu1 %v1792_v13  ;;  %v296_v55 = vld [vmem:[%s2349_s23 + $0x78] sm:$0xff]  ;;  %v321_v56 = vld [vmem:[%s2349_s23 + $0x140] sm:$0xff]  ;;  %v322_v58 = vld [vmem:[%s2349_s23 + $0x148] sm:$0xff] }
  0x47   : > { %1797 = vmatprep.subr.bf16.mxu0 %v1796_v16  ;;  %1816 = vmatprep.subr.bf16.mxu1 %v1796_v16  ;;  %v297_v57 = vld [vmem:[%s2349_s23 + $0x80] sm:$0xff]  ;;  %v298_v59 = vld [vmem:[%s2349_s23 + $0x88] sm:$0xff]  ;;  %v299_v60 = vld [vmem:[%s2349_s23 + $0x90] sm:$0xff] }
  0x48   : > { %v323_v61 = vld [vmem:[%s2349_s23 + $0x150] sm:$0xff]  ;;  %v300_v62 = vld [vmem:[%s2349_s23 + $0x98] sm:$0xff]  ;;  %v301_v0 = vld [vmem:[%s2349_s23 + $0xa0] sm:$0xff] }
  0x49   : > { %v324_v63 = vld [vmem:[%s2349_s23 + $0x158] sm:$0xff]  ;;  %v325_v1 = vld [vmem:[%s2349_s23 + $0x160] sm:$0xff]  ;;  %v302_v2 = vld [vmem:[%s2349_s23 + $0xa8] sm:$0xff] }
  0x4a   : > { %1799 = vmatpush3.bf16.msra.mxu0 %v1796_v16  ;;  %1824 = vmatpush3.bf16.msra.mxu1 %v1796_v16  ;;  %v326_v3 = vld [vmem:[%s2349_s23 + $0x168] sm:$0xff]  ;;  %v303_v4 = vld [vmem:[%s2349_s23 + $0xb0] sm:$0xff]  ;;  %v304_v6 = vld [vmem:[%s2349_s23 + $0xb8] sm:$0xff] }
  0x4b   : > { %1801 = vmatprep.subr.bf16.mxu0 %v1800_v19  ;;  %1817 = vmatprep.subr.bf16.mxu1 %v1800_v19  ;;  %v327_v5 = vld [vmem:[%s2349_s23 + $0x170] sm:$0xff]  ;;  %v328_v7 = vld [vmem:[%s2349_s23 + $0x178] sm:$0xff]  ;;  %v2454_v8 = vld [vmem:[%s3399_s2] ss:$0 sm:$0xff] }
  0x4e   : > { %1803 = vmatpush3.bf16.msra.mxu0 %v1800_v19  ;;  %1825 = vmatpush3.bf16.msra.mxu1 %v1800_v19 }
  0x4f   : > { %1805 = vmatprep.subr.bf16.mxu0 %v1804_v22  ;;  %1818 = vmatprep.subr.bf16.mxu1 %v1804_v22 }
  0x52   : > { %1807 = vmatpush3.bf16.msra.mxu0 %v1804_v22  ;;  %1826 = vmatpush3.bf16.msra.mxu1 %v1804_v22 }
  0x53   : > { %1809 = vmatprep.subr.bf16.mxu0 %v1808_v25  ;;  %1819 = vmatprep.subr.bf16.mxu1 %v1808_v25 }
  0x56   : > { %1811 = vmatpush3.bf16.msra.mxu0 %v1808_v25  ;;  %1827 = vmatpush3.bf16.msra.mxu1 %v1808_v25 }
  0x59   : > { %1709 = vmatmul.mubr.f32.vlgmr.msra.gmra.mrb[0].mxu0 %v282_v26  ;;  %1745 = vmatmul.mubr.f32.vlgmr.msra.gmra.mrb[0].mxu1 %v306_v27 }
  0x5a   : > { %1711 = vmatprep.mubr.f32.mxu0 %v283_v28  ;;  %1747 = vmatprep.mubr.f32.mxu1 %v307_v29 }
  0x5d   : > { %1712 = vmatmul.mubr.f32.gmra.mrb[2].mxu0 %v284_v30  ;;  %1748 = vmatmul.mubr.f32.gmra.mrb[2].mxu1 %v308_v31  ;;  %v2468_v30 = vld [vmem:[%s3400_s3] ss:$0 sm:$0xff] }
  0x5e   : > { %1714 = vmatprep.mubr.f32.mxu0 %v285_v32  ;;  %1750 = vmatprep.mubr.f32.mxu1 %v309_v33 }
  0x61   : > { %1715 = vmatmul.mubr.f32.gmra.mrb[4].mxu0 %v286_v34  ;;  %1751 = vmatmul.mubr.f32.gmra.mrb[4].mxu1 %v310_v35 }
  0x62   : > { %1717 = vmatprep.mubr.f32.mxu0 %v287_v36  ;;  %1753 = vmatprep.mubr.f32.mxu1 %v311_v37 }
  0x65   : > { %1718 = vmatmul.mubr.f32.gmra.mrb[6].mxu0 %v288_v38  ;;  %1754 = vmatmul.mubr.f32.gmra.mrb[6].mxu1 %v312_v39 }
  0x66   : > { %1756 = vmatprep.mubr.f32.mxu1 %v313_v40  ;;  %1720 = vmatprep.mubr.f32.mxu0 %v289_v41 }
  0x69   : > { %1757 = vmatmul.mubr.f32.gmra.mrb[8].mxu1 %v314_v42  ;;  %1721 = vmatmul.mubr.f32.gmra.mrb[8].mxu0 %v290_v43 }
  0x6a   : > { %1759 = vmatprep.mubr.f32.mxu1 %v315_v44  ;;  %1723 = vmatprep.mubr.f32.mxu0 %v291_v45 }
  0x6d   : > { %1760 = vmatmul.mubr.f32.gmra.mrb[10].mxu1 %v316_v46  ;;  %1724 = vmatmul.mubr.f32.gmra.mrb[10].mxu0 %v292_v47 }
  0x6e   : > { %1762 = vmatprep.mubr.f32.mxu1 %v317_v48  ;;  %1726 = vmatprep.mubr.f32.mxu0 %v293_v49 }
  0x71   : > { %1763 = vmatmul.mubr.f32.gmra.mrb[12].mxu1 %v318_v50  ;;  %1727 = vmatmul.mubr.f32.gmra.mrb[12].mxu0 %v294_v51 }
  0x72   : > { %1765 = vmatprep.mubr.f32.mxu1 %v319_v52  ;;  %1729 = vmatprep.mubr.f32.mxu0 %v295_v53 }
  0x75   : > { %1766 = vmatmul.mubr.f32.gmra.mrb[14].mxu1 %v320_v54  ;;  %1730 = vmatmul.mubr.f32.gmra.mrb[14].mxu0 %v296_v55 }
  0x76   : > { %1768 = vmatprep.mubr.f32.mxu1 %v321_v56  ;;  %1732 = vmatprep.mubr.f32.mxu0 %v297_v57 }
  0x79   : > { %1769 = vmatmul.mubr.f32.gmra.mrb[16].mxu1 %v322_v58  ;;  %1733 = vmatmul.mubr.f32.gmra.mrb[16].mxu0 %v298_v59 }
  0x7a   : > { %1735 = vmatprep.mubr.f32.mxu0 %v299_v60  ;;  %1771 = vmatprep.mubr.f32.mxu1 %v323_v61 }
  0x7d   : > { %1736 = vmatmul.mubr.f32.gmra.mrb[18].mxu0 %v300_v62  ;;  %1772 = vmatmul.mubr.f32.gmra.mrb[18].mxu1 %v324_v63 }
  0x7e   : > { %1738 = vmatprep.mubr.f32.mxu0 %v301_v0  ;;  %1774 = vmatprep.mubr.f32.mxu1 %v325_v1 }
  0x81   : > { %1739 = vmatmul.mubr.f32.gmra.mrb[20].mxu0 %v302_v2  ;;  %1775 = vmatmul.mubr.f32.gmra.mrb[20].mxu1 %v326_v3 }
  0x82   : > { %1741 = vmatprep.mubr.f32.mxu0 %v303_v4  ;;  %1777 = vmatprep.mubr.f32.mxu1 %v327_v5 }
  0x85   : > { %1742 = vmatmul.mubr.f32.gmra.mrb[22].mxu0 %v304_v6  ;;  %1778 = vmatmul.mubr.f32.gmra.mrb[22].mxu1 %v328_v7 }
 0x12c   : > { %v1710_v9 = vpop.f32.mrb[0].mxu0  ;;  %v1746_v10 = vpop.f32.mrb[0].mxu1 }
 0x12d   : > { %v424_v11 = vadd.f32 %v1710_v9, %v2454_v8  ;;  %v544_v12 = vadd.f32 %v1746_v10, %v2454_v8  ;;  %v418_v13 = vpop.f32.mrb[1].mxu0  ;;  %v538_v14 = vpop.f32.mrb[1].mxu1 }
 0x12e   : > { %v419_v15 = vadd.f32 %v2454_v8, %v418_v13  ;;  %v539_v16 = vadd.f32 %v2454_v8, %v538_v14 }
 0x12f   : > { %1895 = vtanh.f32 %v424_v11 }
 0x130   : > { %1897 = vtanh.f32 %v544_v12  ;;  %v1713_v17 = vpop.f32.mrb[2].mxu0  ;;  %v1749_v18 = vpop.f32.mrb[2].mxu1 }
 0x131   : > { %1899 = vtanh.f32 %v419_v15  ;;  %v434_v19 = vadd.f32 %v1713_v17, %v2454_v8  ;;  %v428_v20 = vpop.f32.mrb[3].mxu0  ;;  %v548_v21 = vpop.f32.mrb[3].mxu1  ;;  %v554_v22 = vadd.f32 %v1749_v18, %v2454_v8 }
 0x132   : > { %1901 = vtanh.f32 %v539_v16  ;;  %v429_v28 = vadd.f32 %v2454_v8, %v428_v20  ;;  %v549_v44 = vadd.f32 %v2454_v8, %v548_v21 }
 0x133   : > { %1903 = vtanh.f32 %v434_v19 }
 0x134   : > { %v1716_v23 = vpop.f32.mrb[4].mxu0  ;;  %v1752_v24 = vpop.f32.mrb[4].mxu1  ;;  %1905 = vtanh.f32 %v554_v22 }
 0x135   : > { %v564_v25 = vadd.f32 %v1752_v24, %v2454_v8  ;;  %v438_v26 = vpop.f32.mrb[5].mxu0  ;;  %v558_v27 = vpop.f32.mrb[5].mxu1  ;;  %v444_v49 = vadd.f32 %v1716_v23, %v2454_v8 }
 0x136   : > { %v439_v29 = vadd.f32 %v2454_v8, %v438_v26  ;;  %v559_v57 = vadd.f32 %v2454_v8, %v558_v27 }
 0x137   : > { %1907 = vtanh.f32 %v564_v25 }
 0x138   : > { %v1719_v31 = vpop.f32.mrb[6].mxu0  ;;  %v1755_v32 = vpop.f32.mrb[6].mxu1  ;;  %1909 = vtanh.f32 %v439_v29 }
 0x139   : > { %v1896_v33 = vpop.eup %1895  ;;  %v574_v34 = vadd.f32 %v1755_v32, %v2454_v8  ;;  %v448_v35 = vpop.f32.mrb[7].mxu0  ;;  %1911 = vtanh.f32 %v429_v28  ;;  %v454_v4 = vadd.f32 %v1719_v31, %v2454_v8 }
 0x13a   : > { %v568_v36 = vpop.f32.mrb[7].mxu1  ;;  %v1898_v37 = vpop.eup %1897  ;;  %v449_v38 = vadd.f32 %v2454_v8, %v448_v35  ;;  %v713_v40 = vmul.f32 %v1896_v33, %v2468_v30 }
 0x13b   : > { %v569_v39 = vadd.f32 %v2454_v8, %v568_v36  ;;  %v1900_v41 = vpop.eup %1899  ;;  %v737_v42 = vmul.f32 %v1898_v37, %v2468_v30  ;;  %1913 = vtanh.f32 %v574_v34 }
 0x13c   : > { %v1902_v43 = vpop.eup %1901  ;;  %v1758_v45 = vpop.f32.mrb[8].mxu1  ;;  %v764_v46 = vsel %vm760_vm0, %v713_v40, 0.0  ;;  %v712_v48 = vmul.f32 %v1900_v41, %v2468_v30  ;;  %1915 = vtanh.f32 %v449_v38 }
 0x13d   : > { %v1722_v47 = vpop.f32.mrb[8].mxu0  ;;  %v584_v50 = vadd.f32 %v1758_v45, %v2454_v8  ;;  %v836_v51 = vsel %vm760_vm0, %v737_v42, 0.0  ;;  %v578_v52 = vpop.f32.mrb[9].mxu1  ;;  %765 = vadd.xlane.f32.xlu0 %v764_v46  ;;  %1917 = vtanh.f32 %v569_v39  ;;  %v736_v56 = vmul.f32 %v1902_v43, %v2468_v30 }
 0x13e   : > { %v458_v53 = vpop.f32.mrb[9].mxu0  ;;  %v1904_v54 = vpop.eup %1903  ;;  %837 = vadd.xlane.f32.xlu1 %v836_v51  ;;  %v761_v58 = vsel %vm760_vm0, %v712_v48, 0.0  ;;  %v579_v13 = vadd.f32 %v2454_v8, %v578_v52  ;;  %v464_v19 = vadd.f32 %v1722_v47, %v2454_v8 }
 0x13f   : > { %v459_v55 = vadd.f32 %v2454_v8, %v458_v53  ;;  %1919 = vtanh.f32 %v584_v50  ;;  %v1906_v61 = vpop.eup %1905  ;;  %v833_v62 = vsel %vm760_vm0, %v736_v56, 0.0  ;;  %v715_v1 = vmul.f32 %v1904_v54, %v2468_v30 }
 0x140   : > { %1921 = vtanh.f32 %v549_v44  ;;  %v1761_v59 = vpop.f32.mrb[10].mxu1  ;;  %v1725_v60 = vpop.f32.mrb[10].mxu0  ;;  %v739_v15 = vmul.f32 %v1906_v61, %v2468_v30 }
 0x141   : > { %1923 = vtanh.f32 %v444_v49  ;;  %762 = vadd.xlane.f32.xlu0 %v761_v58  ;;  %v594_v63 = vadd.f32 %v1761_v59, %v2454_v8  ;;  %v588_v0 = vpop.f32.mrb[11].mxu1  ;;  %v468_v2 = vpop.f32.mrb[11].mxu0  ;;  %v770_v14 = vsel %vm760_vm0, %v715_v1, 0.0  ;;  %v474_v33 = vadd.f32 %v1725_v60, %v2454_v8 }
 0x142   : > { %v1908_v3 = vpop.eup %1907  ;;  %1925 = vtanh.f32 %v459_v55  ;;  %834 = vadd.xlane.f32.xlu1 %v833_v62  ;;  %v469_v6 = vadd.f32 %v2454_v8, %v468_v2  ;;  %v589_v25 = vadd.f32 %v2454_v8, %v588_v0  ;;  %v842_v34 = vsel %vm760_vm0, %v739_v15, 0.0 }
 0x143   : > { %v1910_v5 = vpop.eup %1909  ;;  %1927 = vtanh.f32 %v594_v63  ;;  %v741_v12 = vmul.f32 %v1908_v3, %v2468_v30 }
 0x144   : > { %v1912_v7 = vpop.eup %1911  ;;  %v716_v9 = vmul.f32 %v1910_v5, %v2468_v30  ;;  %v1764_v10 = vpop.f32.mrb[12].mxu1  ;;  %1929 = vtanh.f32 %v559_v57 }
 0x145   : > { %v2491_v11 = vpop.f32.mrb[12].mxu0  ;;  %v598_v16 = vpop.f32.mrb[13].mxu1  ;;  %1931 = vtanh.f32 %v454_v4  ;;  %v604_v22 = vadd.f32 %v1764_v10, %v2454_v8  ;;  %v714_v23 = vmul.f32 %v1912_v7, %v2468_v30  ;;  %v2506_v29 = vsel %vm760_vm0, %v741_v12, 0.0 }
 0x146   : > { %v478_v17 = vpop.f32.mrb[13].mxu0  ;;  %v1914_v18 = vpop.eup %1913  ;;  %771 = vadd.xlane.f32.xlu1 %v770_v14  ;;  %v773_v20 = vsel %vm760_vm0, %v716_v9, 0.0  ;;  %1933 = vtanh.f32 %v469_v6  ;;  %v599_v39 = vadd.f32 %v2454_v8, %v598_v16 }
 0x147   : > { %v1916_v21 = vpop.eup %1915  ;;  %774 = vadd.xlane.f32.xlu0 %v773_v20  ;;  %v2509_v31 = vmul.f32 %v1914_v18, %v2468_v30  ;;  %1935 = vtanh.f32 %v579_v13  ;;  %v479_v42 = vadd.f32 %v2454_v8, %v478_v17  ;;  %v767_v44 = vsel %vm760_vm0, %v714_v23, 0.0 }
 0x148   : > { %v1918_v24 = vpop.eup %1917  ;;  %v718_v26 = vmul.f32 %v1916_v21, %v2468_v30  ;;  %v1767_v27 = vpop.f32.mrb[14].mxu1  ;;  %1937 = vtanh.f32 %v464_v19 }
 0x149   : > { %v2503_v28 = vpop.f32.mrb[14].mxu0  ;;  %v1920_v32 = vpop.eup %1919  ;;  %1939 = vtanh.f32 %v604_v22  ;;  %v2526_v48 = vmul.f32 %v1918_v24, %v2468_v30  ;;  %v614_v52 = vadd.f32 %v1767_v27, %v2454_v8 }
 0x14a   : > { %v2513_v35 = vpop.f32.mrb[15].mxu1  ;;  %v488_v36 = vpop.f32.mrb[15].mxu0  ;;  %843 = vadd.xlane.f32.xlu1 %v842_v34  ;;  %v779_v38 = vsel %vm760_vm0, %v718_v26, 0.0  ;;  %v745_v40 = vmul.f32 %v1920_v32, %v2468_v30  ;;  %1941 = vtanh.f32 %v589_v25 }
 0x14b   : > { %v1922_v37 = vpop.eup %1921  ;;  %780 = vadd.xlane.f32.xlu0 %v779_v38  ;;  %1943 = vtanh.f32 %v474_v33  ;;  %v489_v55 = vadd.f32 %v2454_v8, %v488_v36 }
 0x14c   : > { %v1924_v41 = vpop.eup %1923  ;;  %v860_v45 = vsel %vm760_vm0, %v745_v40, 0.0  ;;  %v2521_v46 = vpop.f32.mrb[16].mxu1  ;;  %v738_v50 = vmul.f32 %v1922_v37, %v2468_v30  ;;  %1945 = vtanh.f32 %v599_v39 }
 0x14d   : > { %v1926_v43 = vpop.eup %1925  ;;  %v2523_v47 = vpop.f32.mrb[16].mxu0  ;;  %1947 = vtanh.f32 %v479_v42  ;;  %v717_v60 = vmul.f32 %v1924_v41, %v2468_v30 }
 0x14e   : > { %v1928_v49 = vpop.eup %1927  ;;  %v720_v51 = vmul.f32 %v1926_v43, %v2468_v30  ;;  %v618_v53 = vpop.f32.mrb[17].mxu1  ;;  %768 = vadd.xlane.f32.xlu1 %v767_v44  ;;  %v839_v1 = vsel %vm760_vm0, %v738_v50, 0.0  ;;  %v484_v44 = vadd.f32 %v2491_v11, %v2454_v8 }
 0x14f   : > { %v2531_v54 = vpop.f32.mrb[17].mxu0  ;;  %v619_v56 = vadd.f32 %v2454_v8, %v618_v53  ;;  %v1930_v57 = vpop.eup %1929  ;;  %861 = vadd.xlane.f32.xlu0 %v860_v45  ;;  %v747_v61 = vmul.f32 %v1928_v49, %v2468_v30  ;;  %v776_v17 = vsel %vm760_vm0, %v717_v60, 0.0  ;;  %v609_v45 = vadd.f32 %v2454_v8, %v2513_v35 }
 0x150   : > { %v1932_v58 = vpop.eup %1931  ;;  %v785_v59 = vsel %vm760_vm0, %v720_v51, 0.0  ;;  %v1737_v62 = vpop.f32.mrb[18].mxu0  ;;  %v740_v18 = vmul.f32 %v1930_v57, %v2468_v30  ;;  %v2581_v60 = vsel %vm760_vm0, %v2526_v48, 0.0 }
 0x151   : > { %1949 = vtanh.f32 %v619_v56  ;;  %v1773_v63 = vpop.f32.mrb[18].mxu1  ;;  %v1934_v0 = vpop.eup %1933  ;;  %v514_v2 = vadd.f32 %v1737_v62, %v2454_v8  ;;  %v866_v10 = vsel %vm760_vm0, %v747_v61, 0.0  ;;  %v719_v25 = vmul.f32 %v1932_v58, %v2468_v30 }
 0x152   : > { %1951 = vtanh.f32 %v614_v52  ;;  %v508_v3 = vpop.f32.mrb[19].mxu0  ;;  %v634_v4 = vadd.f32 %v1773_v63, %v2454_v8  ;;  %v628_v5 = vpop.f32.mrb[19].mxu1  ;;  %840 = vadd.xlane.f32.xlu1 %v839_v1  ;;  %v722_v12 = vmul.f32 %v1934_v0, %v2468_v30  ;;  %v845_v39 = vsel %vm760_vm0, %v740_v18, 0.0 }
 0x153   : > { %1953 = vtanh.f32 %v489_v55  ;;  %v2541_v6 = vpop.eup %1935  ;;  %786 = vadd.xlane.f32.xlu0 %v785_v59  ;;  %v509_v7 = vadd.f32 %v2454_v8, %v508_v3  ;;  %v629_v14 = vadd.f32 %v2454_v8, %v628_v5  ;;  %v782_v51 = vsel %vm760_vm0, %v719_v25, 0.0 }
 0x154   : > { %1955 = vtanh.f32 %v514_v2  ;;  %v1938_v9 = vpop.eup %1937  ;;  %v1740_v13 = vpop.f32.mrb[20].mxu0  ;;  %v791_v32 = vsel %vm760_vm0, %v722_v12, 0.0  ;;  %v2586_v63 = vsel %vm760_vm0, %v2509_v31, 0.0  ;;  %v494_v1 = vadd.f32 %v2503_v28, %v2454_v8 }
 0x155   : > { %1957 = vtanh.f32 %v634_v4  ;;  %v1776_v15 = vpop.f32.mrb[20].mxu1  ;;  %v1940_v16 = vpop.eup %1939  ;;  %v524_v19 = vadd.f32 %v1740_v13, %v2454_v8  ;;  %v721_v58 = vmul.f32 %v1938_v9, %v2468_v30  ;;  %v624_v2 = vadd.f32 %v2521_v46, %v2454_v8 }
 0x156   : > { %1959 = vtanh.f32 %v509_v7  ;;  %v518_v20 = vpop.f32.mrb[21].mxu0  ;;  %v638_v21 = vpop.f32.mrb[21].mxu1  ;;  %777 = vadd.xlane.f32.xlu1 %v776_v17  ;;  %v644_v26 = vadd.f32 %v1776_v15, %v2454_v8  ;;  %v749_v33 = vmul.f32 %v1940_v16, %v2468_v30  ;;  %v744_v5 = vmul.f32 %v2541_v6, %v2468_v30 }
 0x157   : > { %v2550_v22 = vpop.eup %1941  ;;  %1961 = vtanh.f32 %v629_v14  ;;  %v519_v23 = vadd.f32 %v2454_v8, %v518_v20  ;;  %867 = vadd.xlane.f32.xlu0 %v866_v10  ;;  %v639_v36 = vadd.f32 %v2454_v8, %v638_v21  ;;  %v788_v28 = vsel %vm760_vm0, %v721_v58, 0.0 }
 0x158   : > { %v2553_v24 = vpop.eup %1943  ;;  %1963 = vtanh.f32 %v524_v19  ;;  %v1743_v34 = vpop.f32.mrb[22].mxu0  ;;  %v872_v11 = vsel %vm760_vm0, %v749_v33, 0.0  ;;  %v504_v6 = vadd.f32 %v2523_v47, %v2454_v8  ;;  %v499_v17 = vadd.f32 %v2454_v8, %v2531_v54 }
 0x159   : > { %v1946_v27 = vpop.eup %1945  ;;  %1965 = vtanh.f32 %v519_v23  ;;  %v1779_v37 = vpop.f32.mrb[22].mxu1  ;;  %v534_v40 = vadd.f32 %v1743_v34, %v2454_v8 }
 0x15a   : > { %v1948_v38 = vpop.eup %1947  ;;  %v528_v41 = vpop.f32.mrb[23].mxu0  ;;  %1967 = vtanh.f32 %v644_v26  ;;  %846 = vadd.xlane.f32.xlu1 %v845_v39  ;;  %v654_v53 = vadd.f32 %v1779_v37, %v2454_v8  ;;  %v748_v13 = vmul.f32 %v1946_v27, %v2468_v30  ;;  %v857_v26 = vsel %vm760_vm0, %v744_v5, 0.0 }
 0x15b   : > { %v648_v42 = vpop.f32.mrb[23].mxu1  ;;  %v1950_v43 = vpop.eup %1949  ;;  %v529_v49 = vadd.f32 %v2454_v8, %v528_v41  ;;  %1969 = vtanh.f32 %v639_v36  ;;  %792 = vadd.xlane.f32.xlu0 %v791_v32  ;;  %v724_v56 = vmul.f32 %v1948_v38, %v2468_v30  ;;  %v723_v27 = vmul.f32 %v2553_v24, %v2468_v30 }
 0x15c   : > { %v1952_v50 = vpop.eup %1951  ;;  %1971 = vtanh.f32 %v534_v40  ;;  %v752_v52 = vmul.f32 %v1950_v43, %v2468_v30  ;;  %v649_v35 = vadd.f32 %v2454_v8, %v648_v42  ;;  %v869_v33 = vsel %vm760_vm0, %v748_v13, 0.0 }
 0x15d   : > { %v2570_v55 = vpop.eup %1953  ;;  %1973 = vtanh.f32 %v529_v49  ;;  %v797_v4 = vsel %vm760_vm0, %v724_v56, 0.0  ;;  %v751_v47 = vmul.f32 %v1952_v50, %v2468_v30  ;;  %v746_v49 = vmul.f32 %v2550_v22, %v2468_v30 }
 0x15e   : > { %v1956_v57 = vpop.eup %1955  ;;  %v2577_v59 = vsel %vm760_vm0, %v752_v52, 0.0  ;;  %1975 = vtanh.f32 %v654_v53  ;;  %783 = vadd.xlane.f32.xlu1 %v782_v51  ;;  %v726_v41 = vmul.f32 %v2570_v55, %v2468_v30 }
 0x15f   : > { %v1958_v61 = vpop.eup %1957  ;;  %v731_v62 = vmul.f32 %v1956_v57, %v2468_v30  ;;  %1977 = vtanh.f32 %v649_v35  ;;  %873 = vadd.xlane.f32.xlu0 %v872_v11  ;;  %v878_v40 = vsel %vm760_vm0, %v751_v47, 0.0  ;;  %v863_v35 = vsel %vm760_vm0, %v746_v49, 0.0 }
 0x160   : > { %v1960_v0 = vpop.eup %1959  ;;  %1979 = vtanh.f32 %v484_v44  ;;  %v755_v48 = vmul.f32 %v1958_v61, %v2468_v30  ;;  %v803_v11 = vsel %vm760_vm0, %v726_v41, 0.0 }
 0x161   : > { %v1962_v3 = vpop.eup %1961  ;;  %v2597_v31 = vsel %vm760_vm0, %v731_v62, 0.0  ;;  %v730_v7 = vmul.f32 %v1960_v0, %v2468_v30  ;;  %1981 = vtanh.f32 %v609_v45  ;;  %v794_v45 = vsel %vm760_vm0, %v723_v27, 0.0 }
 0x162   : > { %v1964_v9 = vpop.eup %1963  ;;  %v2602_v10 = vsel %vm760_vm0, %v755_v48, 0.0  ;;  %v754_v46 = vmul.f32 %v1962_v3, %v2468_v30  ;;  %789 = vadd.xlane.f32.xlu1 %v788_v28  ;;  %1983 = vtanh.f32 %v624_v2 }
 0x163   : > { %v1966_v12 = vpop.eup %1965  ;;  %v733_v14 = vmul.f32 %v1964_v9, %v2468_v30  ;;  %v2610_v15 = vsel %vm760_vm0, %v730_v7, 0.0  ;;  %798 = vadd.xlane.f32.xlu0 %v797_v4  ;;  %1985 = vtanh.f32 %v494_v1 }
 0x164   : > { %v1968_v16 = vpop.eup %1967  ;;  %v2615_v18 = vsel %vm760_vm0, %v754_v46, 0.0  ;;  %v732_v19 = vmul.f32 %v1966_v12, %v2468_v30  ;;  %1987 = vtanh.f32 %v504_v6 }
 0x165   : > { %v1970_v20 = vpop.eup %1969  ;;  %v824_v21 = vsel %vm760_vm0, %v733_v14, 0.0  ;;  %v757_v23 = vmul.f32 %v1968_v16, %v2468_v30  ;;  %1989 = vtanh.f32 %v499_v17 }
 0x166   : > { %v1972_v25 = vpop.eup %1971  ;;  %v821_v8 = vsel %vm760_vm0, %v732_v19, 0.0  ;;  %v756_v54 = vmul.f32 %v1970_v20, %v2468_v30  ;;  %858 = vadd.xlane.f32.xlu1 %v857_v26 }
 0x167   : > { %v1974_v32 = vpop.eup %1973  ;;  %v735_v34 = vmul.f32 %v1972_v25, %v2468_v30  ;;  %v896_v36 = vsel %vm760_vm0, %v757_v23, 0.0  ;;  %870 = vadd.xlane.f32.xlu0 %v869_v33 }
 0x168   : > { %v1976_v37 = vpop.eup %1975  ;;  %v734_v38 = vmul.f32 %v1974_v32, %v2468_v30  ;;  %v893_v24 = vsel %vm760_vm0, %v756_v54, 0.0 }
 0x169   : > { %v1978_v39 = vpop.eup %1977  ;;  %v830_v42 = vsel %vm760_vm0, %v735_v34, 0.0  ;;  %v759_v43 = vmul.f32 %v1976_v37, %v2468_v30 }
 0x16a   : > { %v1980_v44 = vpop.eup %1979  ;;  %v827_v50 = vsel %vm760_vm0, %v734_v38, 0.0  ;;  %v758_v51 = vmul.f32 %v1978_v39, %v2468_v30  ;;  %795 = vadd.xlane.f32.xlu1 %v794_v45 }
 0x16b   : > { %v902_v52 = vsel %vm760_vm0, %v759_v43, 0.0  ;;  %v1982_v53 = vpop.eup %1981  ;;  %879 = vadd.xlane.f32.xlu0 %v878_v40  ;;  %v725_v57 = vmul.f32 %v1980_v44, %v2468_v30 }
 0x16c   : > { %v899_v55 = vsel %vm760_vm0, %v758_v51, 0.0  ;;  %v1984_v56 = vpop.eup %1983  ;;  %v750_v22 = vmul.f32 %v1982_v53, %v2468_v30 }
 0x16d   : > { %v1986_v58 = vpop.eup %1985  ;;  %v753_v62 = vmul.f32 %v1984_v56, %v2468_v30  ;;  %v800_v1 = vsel %vm760_vm0, %v725_v57, 0.0 }
 0x16e   : > { %864 = vadd.xlane.f32.xlu1 %v863_v35  ;;  %v1988_v61 = vpop.eup %1987  ;;  %v727_v2 = vmul.f32 %v1986_v58, %v2468_v30  ;;  %v875_v48 = vsel %vm760_vm0, %v750_v22, 0.0 }
 0x16f   : > { %804 = vadd.xlane.f32.xlu0 %v803_v11  ;;  %v1990_v0 = vpop.eup %1989  ;;  %v729_v3 = vmul.f32 %v1988_v61, %v2468_v30  ;;  %v884_v4 = vsel %vm760_vm0, %v753_v62, 0.0 }
 0x170   : > { %v728_v5 = vmul.f32 %v1990_v0, %v2468_v30  ;;  %v806_v7 = vsel %vm760_vm0, %v727_v2, 0.0 }
 0x171   : > { %v812_v9 = vsel %vm760_vm0, %v729_v3, 0.0 }
 0x172   : > { %801 = vadd.xlane.f32.xlu1 %v800_v1  ;;  %v809_v28 = vsel %vm760_vm0, %v728_v5, 0.0 }
 0x173   : > { %876 = vadd.xlane.f32.xlu0 %v875_v48 }
 0x176   : > { %807 = vadd.xlane.f32.xlu1 %v806_v7 }
 0x177   : > { %885 = vadd.xlane.f32.xlu0 %v884_v4 }
 0x17a   : > { %813 = vadd.xlane.f32.xlu1 %v812_v9 }
 0x17b   : > { %810 = vadd.xlane.f32.xlu0 %v809_v28 }
 0x17e   : > { %819 = vadd.xlane.f32.xlu1 %v2597_v31 }
 0x17f   : > { %882 = vadd.xlane.f32.xlu0 %v2577_v59 }
 0x182   : > { %825 = vadd.xlane.f32.xlu1 %v824_v21 }
 0x183   : > { %891 = vadd.xlane.f32.xlu0 %v2602_v10 }
 0x186   : > { %831 = vadd.xlane.f32.xlu1 %v830_v42 }
 0x187   : > { %816 = vadd.xlane.f32.xlu0 %v2610_v15 }
 0x18a   : > { %828 = vadd.xlane.f32.xlu1 %v827_v50 }
 0x18b   : > { %888 = vadd.xlane.f32.xlu0 %v2615_v18 }
 0x18e   : > { %849 = vadd.xlane.f32.xlu1 %v2506_v29 }
 0x18f   : > { %822 = vadd.xlane.f32.xlu0 %v821_v8 }
 0x192   : > { %852 = vadd.xlane.f32.xlu1 %v2581_v60 }
 0x193   : > { %894 = vadd.xlane.f32.xlu0 %v893_v24 }
 0x196   : > { %855 = vadd.xlane.f32.xlu1 %v2586_v63 }
 0x197   : > { %897 = vadd.xlane.f32.xlu0 %v896_v36 }
 0x19a   : > { %903 = vadd.xlane.f32.xlu1 %v902_v52 }
 0x19b   : > { %900 = vadd.xlane.f32.xlu0 %v899_v55 }
 0x1ca   : > { %v766_v30 = vpop.xlane.xlu0 %765 }
 0x1cb   : > { %v838_v59 = vpop.xlane.xlu1 %837 }
 0x1ce   : > { %v763_v31 = vpop.xlane.xlu0 %762 }
 0x1cf   : > { %v2665_v10 = vpop.xlane.xlu1 %834 }
 0x1d3   : > { %v2667_v46 = vpop.xlane.xlu1 %771 }
 0x1d4   : > { %v2669_v12 = vpop.xlane.xlu0 %774 }
 0x1d7   : > { %v2671_v13 = vpop.xlane.xlu1 %843 }
 0x1d8   : > { %v2673_v29 = vpop.xlane.xlu0 %780 }
 0x1db   : > { %v2675_v60 = vpop.xlane.xlu1 %768 }
 0x1dc   : > { %v862_v6 = vpop.xlane.xlu0 %861 }
 0x1df   : > { %v2677_v63 = vpop.xlane.xlu1 %840 }
 0x1e0   : > { %v2679_v14 = vpop.xlane.xlu0 %786 }
 0x1e1   : > { %v921_v15 = vmax.f32 %v2679_v14, %v2665_v10 }
 0x1e3   : > { %v2683_v16 = vpop.xlane.xlu1 %777 }
 0x1e4   : > { %v2685_v17 = vpop.xlane.xlu0 %867 }
 0x1e7   : > { %v2687_v18 = vpop.xlane.xlu1 %846 }
 0x1e8   : > { %v2689_v19 = vpop.xlane.xlu0 %792 }
 0x1e9   : > { %v925_v48 = vmax.f32 %v2689_v19, %v2677_v63 }
 0x1eb   : > { %v2691_v20 = vpop.xlane.xlu1 %783 }
 0x1ec   : > { %v2693_v47 = vpop.xlane.xlu0 %873 }
 0x1ef   : > { %v790_v21 = vpop.xlane.xlu1 %789 }
 0x1f0   : > { %v2695_v23 = vpop.xlane.xlu0 %798  ;;  %v923_v36 = vmax.f32 %v790_v21, %v838_v59 }
 0x1f3   : > { %v859_v25 = vpop.xlane.xlu1 %858 }
 0x1f4   : > { %v2697_v26 = vpop.xlane.xlu0 %870 }
 0x1f7   : > { %v2699_v27 = vpop.xlane.xlu1 %795 }
 0x1f8   : > { %v2701_v8 = vpop.xlane.xlu0 %879 }
 0x1fb   : > { %v2703_v54 = vpop.xlane.xlu1 %864 }
 0x1fc   : > { %v2705_v32 = vpop.xlane.xlu0 %804 }
 0x1ff   : > { %v2707_v33 = vpop.xlane.xlu1 %801 }
 0x200   : > { %v2709_v34 = vpop.xlane.xlu0 %876 }
 0x203   : > { %v2711_v37 = vpop.xlane.xlu1 %807 }
 0x204   : > { %v886_v38 = vpop.xlane.xlu0 %885 }
 0x205   : > { %v924_v24 = vmax.f32 %v923_v36, %v886_v38 }
 0x207   : > { %v946_v39 = vsub.f32 %v790_v21, %v924_v24  ;;  %v962_v40 = vsub.f32 %v838_v59, %v924_v24  ;;  %v978_v41 = vsub.f32 %v886_v38, %v924_v24  ;;  %v814_v42 = vpop.xlane.xlu1 %813  ;;  %v929_v38 = vmax.f32 %v2695_v23, %v2687_v18 }
 0x208   : > { %v907_v43 = vmax.f32 %v766_v30, %v814_v42  ;;  %v811_v44 = vpop.xlane.xlu0 %810  ;;  %v927_v24 = vmax.f32 %v2699_v27, %v2671_v13 }
 0x209   : > { %v1003_v45 = vmul.f32 1.442695, %v946_v39  ;;  %v1035_v49 = vmul.f32 1.442695, %v962_v40  ;;  %v1067_v50 = vmul.f32 1.442695, %v978_v41  ;;  %v905_v51 = vmax.f32 %v763_v31, %v811_v44 }
 0x20a   : > { %v908_v52 = vmax.f32 %v907_v43, %v862_v6 }
 0x20b   : > { %1991 = vpow2.f32 %v1003_v45  ;;  %v906_v53 = vmax.f32 %v905_v51, %v859_v25  ;;  %v820_v55 = vpop.xlane.xlu1 %819 }
 0x20c   : > { %1993 = vpow2.f32 %v1035_v49  ;;  %v938_v11 = vsub.f32 %v766_v30, %v908_v52  ;;  %v954_v56 = vsub.f32 %v814_v42, %v908_v52  ;;  %v970_v35 = vsub.f32 %v862_v6, %v908_v52  ;;  %v883_v57 = vpop.xlane.xlu0 %882 }
 0x20d   : > { %1995 = vpow2.f32 %v1067_v50  ;;  %v937_v58 = vsub.f32 %v763_v31, %v906_v53  ;;  %v953_v22 = vsub.f32 %v811_v44, %v906_v53  ;;  %v969_v61 = vsub.f32 %v859_v25, %v906_v53 }
 0x20e   : > { %v987_v62 = vmul.f32 1.442695, %v938_v11  ;;  %v1019_v0 = vmul.f32 1.442695, %v954_v56  ;;  %v1051_v1 = vmul.f32 1.442695, %v970_v35  ;;  %v911_v2 = vmax.f32 %v2667_v46, %v820_v55 }
 0x20f   : > { %v985_v3 = vmul.f32 1.442695, %v937_v58  ;;  %v1017_v4 = vmul.f32 1.442695, %v953_v22  ;;  %v922_v5 = vmax.f32 %v921_v15, %v883_v57  ;;  %v826_v7 = vpop.xlane.xlu1 %825  ;;  %v1049_v9 = vmul.f32 1.442695, %v969_v61 }
 0x210   : > { %1997 = vpow2.f32 %v987_v62  ;;  %v912_v28 = vmax.f32 %v911_v2, %v2685_v17  ;;  %v915_v30 = vmax.f32 %v2683_v16, %v826_v7  ;;  %v892_v59 = vpop.xlane.xlu0 %891 }
 0x211   : > { %1999 = vpow2.f32 %v1019_v0  ;;  %v945_v31 = vsub.f32 %v2679_v14, %v922_v5  ;;  %v961_v6 = vsub.f32 %v2665_v10, %v922_v5  ;;  %v977_v21 = vsub.f32 %v883_v57, %v922_v5 }
 0x212   : > { %2001 = vpow2.f32 %v1051_v1  ;;  %v940_v25 = vsub.f32 %v2667_v46, %v912_v28  ;;  %v956_v36 = vsub.f32 %v820_v55, %v912_v28  ;;  %v972_v15 = vsub.f32 %v2685_v17, %v912_v28 }
 0x213   : > { %2003 = vpow2.f32 %v985_v3  ;;  %v1001_v39 = vmul.f32 1.442695, %v945_v31  ;;  %v832_v40 = vpop.xlane.xlu1 %831  ;;  %v1033_v46 = vmul.f32 1.442695, %v961_v6  ;;  %v916_v17 = vmax.f32 %v915_v30, %v2693_v47 }
 0x214   : > { %2005 = vpow2.f32 %v1017_v4  ;;  %v991_v14 = vmul.f32 1.442695, %v940_v25  ;;  %v1023_v41 = vmul.f32 1.442695, %v956_v36  ;;  %v1055_v10 = vmul.f32 1.442695, %v972_v15  ;;  %v2726_v42 = vpop.xlane.xlu0 %816 }
 0x215   : > { %v2728_v43 = vpop.eup %1991  ;;  %2007 = vpow2.f32 %v1049_v9  ;;  %v928_v44 = vmax.f32 %v927_v24, %v892_v59  ;;  %v1065_v49 = vmul.f32 1.442695, %v977_v21  ;;  %v919_v50 = vmax.f32 %v2691_v20, %v832_v40 }
 0x216   : > { %v2731_v45 = vpop.eup %1993  ;;  %2009 = vpow2.f32 %v991_v14  ;;  %v909_v51 = vmax.f32 %v2675_v60, %v2726_v42  ;;  %v942_v55 = vsub.f32 %v2683_v16, %v916_v17  ;;  %v958_v11 = vsub.f32 %v826_v7, %v916_v17 }
 0x217   : > { %v2736_v52 = vpop.eup %1995  ;;  %v1099_v53 = vadd.f32 %v2731_v45, %v2728_v43  ;;  %2011 = vpow2.f32 %v1023_v41  ;;  %v2741_v56 = vpop.xlane.xlu1 %828  ;;  %v974_v35 = vsub.f32 %v2693_v47, %v916_v17  ;;  %v948_v57 = vsub.f32 %v2699_v27, %v928_v44 }
 0x218   : > { %2013 = vpow2.f32 %v1055_v10  ;;  %v964_v58 = vsub.f32 %v2671_v13, %v928_v44  ;;  %v2746_v22 = vpop.xlane.xlu0 %888  ;;  %v995_v62 = vmul.f32 1.442695, %v942_v55  ;;  %v1027_v0 = vmul.f32 1.442695, %v958_v11 }
 0x219   : > { %v1100_v61 = vadd.f32 %v2736_v52, %v1099_v53  ;;  %2015 = vpow2.f32 %v1001_v39  ;;  %v1059_v16 = vmul.f32 1.442695, %v974_v35  ;;  %v980_v2 = vsub.f32 %v892_v59, %v928_v44 }
 0x21a   : > { %v2749_v1 = vpop.eup %1997  ;;  %2017 = vpow2.f32 %v1033_v46  ;;  %v1007_v3 = vmul.f32 1.442695, %v948_v57  ;;  %v1039_v47 = vmul.f32 1.442695, %v964_v58  ;;  %v920_v27 = vmax.f32 %v919_v50, %v2701_v8 }
 0x21b   : > { %v2751_v4 = vpop.eup %1999  ;;  %2019 = vrcp.f32 %v1100_v61  ;;  %v910_v13 = vmax.f32 %v909_v51, %v2703_v54  ;;  %v2755_v5 = vpop.xlane.xlu1 %849  ;;  %v1071_v28 = vmul.f32 1.442695, %v980_v2  ;;  %v917_v30 = vmax.f32 %v2673_v29, %v2741_v56 }
 0x21c   : > { %v2757_v7 = vpop.eup %2001  ;;  %v1083_v9 = vadd.f32 %v2751_v4, %v2749_v1  ;;  %2021 = vpow2.f32 %v1065_v49  ;;  %v2763_v59 = vpop.xlane.xlu0 %822  ;;  %v944_v6 = vsub.f32 %v2691_v20, %v920_v27  ;;  %v960_v21 = vsub.f32 %v832_v40, %v920_v27 }
 0x21d   : > { %v2765_v31 = vpop.eup %2003  ;;  %2023 = vpow2.f32 %v995_v62  ;;  %v976_v25 = vsub.f32 %v2701_v8, %v920_v27  ;;  %v939_v24 = vsub.f32 %v2675_v60, %v910_v13  ;;  %v955_v39 = vsub.f32 %v2726_v42, %v910_v13 }
 0x21e   : > { %v2769_v36 = vpop.eup %2005  ;;  %v1084_v15 = vadd.f32 %v2757_v7, %v1083_v9  ;;  %2025 = vpow2.f32 %v1027_v0  ;;  %v999_v10 = vmul.f32 1.442695, %v944_v6  ;;  %v1031_v20 = vmul.f32 1.442695, %v960_v21 }
 0x21f   : > { %v2774_v14 = vpop.eup %2007  ;;  %v1081_v41 = vadd.f32 %v2769_v36, %v2765_v31  ;;  %2027 = vpow2.f32 %v1059_v16  ;;  %v1063_v8 = vmul.f32 1.442695, %v976_v25  ;;  %v971_v46 = vsub.f32 %v2703_v54, %v910_v13  ;;  %v2781_v44 = vpop.xlane.xlu1 %852 }
 0x220   : > { %v2778_v40 = vpop.eup %2009  ;;  %2029 = vrcp.f32 %v1084_v15  ;;  %v989_v17 = vmul.f32 1.442695, %v939_v24  ;;  %v2783_v60 = vpop.xlane.xlu0 %894  ;;  %v1021_v50 = vmul.f32 1.442695, %v955_v39  ;;  %v918_v51 = vmax.f32 %v917_v30, %v2709_v34 }
 0x221   : > { %v2785_v42 = vpop.eup %2011  ;;  %v1082_v49 = vadd.f32 %v2774_v14, %v1081_v41  ;;  %2031 = vpow2.f32 %v1007_v3  ;;  %v1053_v54 = vmul.f32 1.442695, %v971_v46  ;;  %v926_v11 = vmax.f32 %v925_v48, %v2746_v22 }
 0x222   : > { %v2789_v53 = vpop.eup %2013  ;;  %v1087_v55 = vadd.f32 %v2785_v42, %v2778_v40  ;;  %2033 = vpow2.f32 %v1039_v47  ;;  %v943_v57 = vsub.f32 %v2673_v29, %v918_v51  ;;  %v959_v58 = vsub.f32 %v2741_v56, %v918_v51 }
 0x223   : > { %v2797_v35 = vpop.eup %2015  ;;  %2035 = vrcp.f32 %v1082_v49  ;;  %v975_v61 = vsub.f32 %v2709_v34, %v918_v51  ;;  %v947_v16 = vsub.f32 %v2689_v19, %v926_v11  ;;  %v963_v2 = vsub.f32 %v2677_v63, %v926_v11  ;;  %v2816_v19 = vpop.xlane.xlu1 %855 }
 0x224   : > { %v2802_v62 = vpop.eup %2017  ;;  %v1088_v0 = vadd.f32 %v2789_v53, %v1087_v55  ;;  %2037 = vpow2.f32 %v1071_v28  ;;  %v2807_v3 = vpop.xlane.xlu0 %897  ;;  %v997_v56 = vmul.f32 1.442695, %v943_v57  ;;  %v1029_v47 = vmul.f32 1.442695, %v959_v58 }
 0x225   : > { %v2809_v48 = vpop.eup %2019  ;;  %v1097_v29 = vadd.f32 %v2802_v62, %v2797_v35  ;;  %2039 = vpow2.f32 %v999_v10  ;;  %v1061_v27 = vmul.f32 1.442695, %v975_v61  ;;  %v979_v13 = vsub.f32 %v2746_v22, %v926_v11 }
 0x226   : > { %v2813_v34 = vpop.eup %2021  ;;  %2041 = vrcp.f32 %v1088_v0  ;;  %v1005_v9 = vmul.f32 1.442695, %v947_v16  ;;  %v1037_v30 = vmul.f32 1.442695, %v963_v2  ;;  %v931_v6 = vmax.f32 %v2707_v33, %v2755_v5 }
 0x227   : > { %v2818_v63 = vpop.eup %2023  ;;  %v1098_v28 = vadd.f32 %v2813_v34, %v1097_v29  ;;  %2043 = vpow2.f32 %v1031_v20  ;;  %v1069_v25 = vmul.f32 1.442695, %v979_v13  ;;  %v913_v15 = vmax.f32 %v2669_v12, %v2763_v59 }
 0x228   : > { %v2823_v21 = vpop.eup %2025  ;;  %2045 = vpow2.f32 %v1063_v8  ;;  %v933_v22 = vmax.f32 %v2705_v32, %v2781_v44  ;;  %v2829_v24 = vpop.xlane.xlu0 %900  ;;  %v930_v10 = vmax.f32 %v929_v38, %v2783_v60  ;;  %v935_v20 = vmax.f32 %v2711_v37, %v2816_v19 }
 0x229   : > { %v2831_v39 = vpop.eup %2027  ;;  %2047 = vrcp.f32 %v1098_v28  ;;  %v1091_v41 = vadd.f32 %v2823_v21, %v2818_v63  ;;  %v914_v46 = vmax.f32 %v913_v15, %v2697_v26  ;;  %v932_v49 = vmax.f32 %v931_v6, %v2807_v3 }
 0x22a   : > { %v2841_v8 = vpop.eup %2029  ;;  %2049 = vpow2.f32 %v989_v17  ;;  %v2846_v51 = vmax.f32 %v933_v22, %v2829_v24  ;;  %v949_v38 = vsub.f32 %v2695_v23, %v930_v10  ;;  %v965_v57 = vsub.f32 %v2687_v18, %v930_v10 }
 0x22b   : > { %v2848_v55 = vpop.eup %2031  ;;  %v1092_v11 = vadd.f32 %v2831_v39, %v1091_v41  ;;  %2051 = vpow2.f32 %v1021_v50  ;;  %v941_v17 = vsub.f32 %v2669_v12, %v914_v46  ;;  %v957_v61 = vsub.f32 %v2763_v59, %v914_v46  ;;  %v904_v12 = vpop.xlane.xlu1 %903 }
 0x22c   : > { %v2853_v58 = vpop.eup %2033  ;;  %2053 = vpow2.f32 %v1053_v54  ;;  %v973_v0 = vsub.f32 %v2697_v26, %v914_v46  ;;  %v981_v50 = vsub.f32 %v2783_v60, %v930_v10  ;;  %v1009_v23 = vmul.f32 1.442695, %v949_v38 }
 0x22d   : > { %v2858_v16 = vpop.eup %2035  ;;  %2055 = vrcp.f32 %v1092_v11  ;;  %v1103_v2 = vadd.f32 %v2853_v58, %v2848_v55  ;;  %v993_v18 = vmul.f32 1.442695, %v941_v17  ;;  %v1025_v54 = vmul.f32 1.442695, %v957_v61 }
 0x22e   : > { %v2863_v29 = vpop.eup %2037  ;;  %2057 = vpow2.f32 %v997_v56  ;;  %v1057_v13 = vmul.f32 1.442695, %v973_v0  ;;  %v2868_v59 = vmul.f32 1.442695, %v965_v57  ;;  %v2870_v6 = vmul.f32 1.442695, %v981_v50 }
 0x22f   : > { %v2865_v28 = vpop.eup %2039  ;;  %v1104_v26 = vadd.f32 %v2863_v29, %v1103_v2  ;;  %2059 = vpow2.f32 %v1029_v47  ;;  %v950_v60 = vsub.f32 %v2707_v33, %v932_v49  ;;  %v966_v56 = vsub.f32 %v2755_v5, %v932_v49  ;;  %v1177_v2 = vld [vmem:[%s2349_s23] sm:$0xff] }
 0x230   : > { %v2872_v15 = vpop.eup %2041  ;;  %2061 = vpow2.f32 %v1061_v27  ;;  %v982_v22 = vsub.f32 %v2807_v3, %v932_v49  ;;  %v936_v10 = vmax.f32 %v935_v20, %v904_v12  ;;  %v951_v47 = vsub.f32 %v2705_v32, %v2846_v51 }
 0x231   : > { %v2877_v41 = vpop.eup %2043  ;;  %2063 = vrcp.f32 %v1104_v26  ;;  %v967_v46 = vsub.f32 %v2781_v44, %v2846_v51  ;;  %v2887_v33 = vmul.f32 1.442695, %v950_v60  ;;  %v2889_v5 = vmul.f32 1.442695, %v966_v56  ;;  %v1573_v60 = vld [vmem:[%s2349_s23 + $0x88] sm:$0xff] }
 0x232   : > { %v2883_v11 = vpop.eup %2045  ;;  %v1095_v27 = vadd.f32 %v2877_v41, %v2865_v28  ;;  %2065 = vpow2.f32 %v1005_v9  ;;  %v2893_v20 = vmul.f32 1.442695, %v982_v22  ;;  %v952_v32 = vsub.f32 %v2711_v37, %v936_v10  ;;  %v1178_v56 = vld [vmem:[%s2349_s23 + $0x8] sm:$0xff] }
 0x233   : > { %v2891_v3 = vpop.eup %2047  ;;  %2067 = vpow2.f32 %v1037_v30  ;;  %v968_v49 = vsub.f32 %v2816_v19, %v936_v10  ;;  %v984_v9 = vsub.f32 %v904_v12, %v936_v10  ;;  %v983_v57 = vsub.f32 %v2829_v24, %v2846_v51  ;;  %v1572_v51 = vld [vmem:[%s2349_s23 + $0x80] sm:$0xff] }
 0x234   : > { %v2897_v44 = vpop.eup %2049  ;;  %v1096_v38 = vadd.f32 %v2883_v11, %v1095_v27  ;;  %2069 = vpow2.f32 %v1069_v25  ;;  %v2904_v30 = vmul.f32 1.442695, %v952_v32  ;;  %v2908_v19 = vmul.f32 1.442695, %v951_v47 }
 0x235   : > { %v2902_v17 = vpop.eup %2051  ;;  %2071 = vpow2.f32 %v993_v18  ;;  %v2906_v37 = vmul.f32 1.442695, %v968_v49  ;;  %v2914_v0 = vmul.f32 1.442695, %v984_v9  ;;  %v2916_v24 = vmul.f32 1.442695, %v967_v46 }
 0x236   : > { %v2910_v61 = vpop.eup %2053  ;;  %2073 = vrcp.f32 %v1096_v38  ;;  %v1085_v25 = vadd.f32 %v2902_v17, %v2897_v44  ;;  %v2922_v18 = vmul.f32 1.442695, %v983_v57  ;;  %v1145_v12 = vmul.f32 %v2858_v16, %v2769_v36  ;;  %v1575_v46 = vld [vmem:[%s2349_s23 + $0x98] sm:$0xff] }
 0x237   : > { %v2920_v50 = vpop.eup %2055  ;;  %2075 = vpow2.f32 %v1025_v54  ;;  %v1114_v26 = vmul.f32 %v2858_v16, %v2765_v31  ;;  %v1146_v47 = vmul.f32 %v2841_v8, %v2751_v4  ;;  %v1116_v54 = vmul.f32 %v2841_v8, %v2749_v1 }
 0x238   : > { %v2930_v22 = vpop.eup %2057  ;;  %v1086_v10 = vadd.f32 %v2910_v61, %v1085_v25  ;;  %2077 = vpow2.f32 %v1057_v13  ;;  %1355 = vxpose.xlu1.b32.start [1/16] (narrow) %v1145_v12, 8  ;;  %v1226_v31 = vmul.f32 %v1572_v51, %v1145_v12  ;;  %v2942_v32 = vmul.f32 %v2872_v15, %v2785_v42  ;;  %v1577_v25 = vld [vmem:[%s2349_s23 + $0xa8] sm:$0xff] }
 0x239   : > { %v2938_v27 = vpop.eup %2059  ;;  %2079 = vpow2.f32 %v1009_v23  ;;  %1323 = vxpose.xlu0.b32.start [1/16] (narrow) %v1114_v26, 8  ;;  %v1193_v36 = vmul.f32 %v1177_v2, %v1114_v26  ;;  %v1227_v4 = vmul.f32 %v1573_v60, %v1146_v47  ;;  %v1194_v49 = vmul.f32 %v1178_v56, %v1116_v54  ;;  %v1180_v23 = vld [vmem:[%s2349_s23 + $0x18] sm:$0xff]  ;;  %v1182_v26 = vld [vmem:[%s2349_s23 + $0x28] sm:$0xff]  ;;  %v1580_v60 = vld [vmem:[%s2349_s23 + $0xc0] sm:$0xff] }
 0x23a   : > { %v2944_v13 = vpop.eup %2061  ;;  %2081 = vrcp.f32 %v1086_v10  ;;  %v1093_v1 = vadd.f32 %v2938_v27, %v2930_v22  ;;  %v1229_v42 = vmul.f32 %v1575_v46, %v2942_v32  ;;  %v2957_v57 = vmul.f32 %v2872_v15, %v2778_v40 }
 0x23b   : > { %v2949_v38 = vpop.eup %2063  ;;  %2083 = vpow2.f32 %v2868_v59  ;;  %v2952_v9 = vadd.f32 %v1226_v31, %v1193_v36  ;;  %v2964_v12 = vadd.f32 %v1227_v4, %v1194_v49  ;;  %v2968_v59 = vmul.f32 %v2920_v50, %v2823_v21  ;;  %v1185_v21 = vld [vmem:[%s2349_s23 + $0x40] sm:$0xff] }
 0x23c   : > { %v2960_v51 = vpop.eup %2065  ;;  %v1094_v2 = vadd.f32 %v2944_v13, %v1093_v1  ;;  %2085 = vpow2.f32 %v2870_v6  ;;  %1356 = vxpose.xlu1.b32.cont [2/16] (narrow) %v1146_v47, 8  ;;  %v1196_v40 = vmul.f32 %v1180_v23, %v2957_v57  ;;  %v2978_v6 = vmul.f32 %v2920_v50, %v2818_v63  ;;  %v1581_v1 = vld [vmem:[%s2349_s23 + $0xc8] sm:$0xff]  ;;  %v1579_v23 = vld [vmem:[%s2349_s23 + $0xb8] sm:$0xff] }
 0x23d   : > { %v2972_v56 = vpop.eup %2067  ;;  %2087 = vpow2.f32 %v2887_v33  ;;  %1324 = vxpose.xlu0.b32.cont [2/16] (narrow) %v1116_v54, 8  ;;  %v2982_v10 = vmul.f32 %v2891_v3, %v2802_v62  ;;  %v1231_v47 = vmul.f32 %v1577_v25, %v2968_v59  ;;  %v2992_v54 = vmul.f32 %v2891_v3, %v2797_v35  ;;  %v1184_v35 = vld [vmem:[%s2349_s23 + $0x38] sm:$0xff] }
 0x23e   : > { %v2985_v46 = vpop.eup %2069  ;;  %2089 = vrcp.f32 %v1094_v2  ;;  %v1101_v33 = vadd.f32 %v2972_v56, %v2960_v51  ;;  %v2997_v62 = vadd.f32 %v1229_v42, %v1196_v40  ;;  %v1198_v31 = vmul.f32 %v1182_v26, %v2978_v6 }
 0x23f   : > { %3413 = vst [vmem:[#allocation14_spill] sm:$0xff] %v2982_v10  ;;  %3414 = vst [vmem:[#allocation15_spill] sm:$0xff] %v2992_v54  ;;  %v2994_v63 = vpop.eup %2071  ;;  %2091 = vpow2.f32 %v2889_v5  ;;  %v1234_v36 = vmul.f32 %v1580_v60, %v2982_v10  ;;  %v1201_v25 = vmul.f32 %v1185_v21, %v2992_v54  ;;  %v3011_v5 = vmul.f32 %v2809_v48, %v2731_v45 }
 0x240   : > { %v3002_v4 = vpop.eup %2073  ;;  %v1102_v49 = vadd.f32 %v2985_v46, %v1101_v33  ;;  %2093 = vpow2.f32 %v2893_v20  ;;  %v3016_v2 = vadd.f32 %v1231_v47, %v1198_v31  ;;  %v3040_v33 = vmul.f32 %v2809_v48, %v2728_v43  ;;  %v1186_v47 = vld [vmem:[%s2349_s23 + $0x48] sm:$0xff]  ;;  %v1583_v31 = vld [vmem:[%s2349_s23 + $0xd8] sm:$0xff] }
 0x241   : > { %3415 = vst [vmem:[#allocation16_spill] sm:$0xff] %v3011_v5  ;;  %v3013_v42 = vpop.eup %2075  ;;  %2095 = vpow2.f32 %v2904_v30  ;;  %v3020_v26 = vmul.f32 %v3002_v4, %v2877_v41  ;;  %v3024_v20 = vmul.f32 %v3002_v4, %v2865_v28  ;;  %v3030_v40 = vadd.f32 %v1234_v36, %v1201_v25  ;;  %v1179_v25 = vld [vmem:[%s2349_s23 + $0x10] sm:$0xff] }
 0x242   : > { %v3026_v60 = vpop.eup %2077  ;;  %2097 = vrcp.f32 %v1102_v49  ;;  %v1089_v45 = vadd.f32 %v3013_v42, %v2994_v63  ;;  %v1235_v30 = vmul.f32 %v1581_v1, %v3011_v5  ;;  %v1574_v1 = vld [vmem:[%s2349_s23 + $0x90] sm:$0xff] }
 0x243   : > { %3416 = vst [vmem:[#allocation17_spill] sm:$0xff] %v3024_v20  ;;  %v3033_v21 = vpop.eup %2079  ;;  %2099 = vpow2.f32 %v2906_v37  ;;  %v1233_v28 = vmul.f32 %v1579_v23, %v3020_v26  ;;  %v1200_v41 = vmul.f32 %v1184_v35, %v3024_v20  ;;  %v3050_v37 = vmul.f32 %v2949_v38, %v2853_v58  ;;  %v1188_v35 = vld [vmem:[%s2349_s23 + $0x58] sm:$0xff] }
 0x244   : > { %v2082_v49 = vpop.eup %2081  ;;  %v1090_v36 = vadd.f32 %v3026_v60, %v1089_v45  ;;  %2101 = vpow2.f32 %v2914_v0  ;;  %v3054_v23 = vmul.f32 %v2949_v38, %v2848_v55  ;;  %v1202_v58 = vmul.f32 %v1186_v47, %v3040_v33  ;;  %v1578_v47 = vld [vmem:[%s2349_s23 + $0xb0] sm:$0xff] }
 0x245   : > { %3417 = vst [vmem:[#allocation18_spill] sm:$0xff] %v3050_v37  ;;  %v3057_v43 = vpop.eup %2083  ;;  %2103 = vpow2.f32 %v2908_v19  ;;  %v1147_v45 = vmul.f32 %v2082_v49, %v2902_v17  ;;  %v1118_v0 = vmul.f32 %v2082_v49, %v2897_v44  ;;  %v3062_v5 = vadd.f32 %v1233_v28, %v1200_v41  ;;  %v1588_v41 = vld [vmem:[%s2349_s23 + $0x100] sm:$0xff] }
 0x246   : > { %v3064_v54 = vpop.eup %2085  ;;  %2105 = vrcp.f32 %v1090_v36  ;;  %v1105_v55 = vadd.f32 %v3057_v43, %v3033_v21  ;;  %v1237_v10 = vmul.f32 %v1583_v31, %v3050_v37  ;;  %v1204_v28 = vmul.f32 %v1188_v35, %v3054_v23  ;;  %v1183_v31 = vld [vmem:[%s2349_s23 + $0x30] sm:$0xff] }
 0x247   : > { %v3070_v19 = vpop.eup %2087  ;;  %2107 = vpow2.f32 %v2916_v24  ;;  %1357 = vxpose.xlu1.b32.cont [3/16] (narrow) %v1147_v45, 8  ;;  %v1228_v44 = vmul.f32 %v1574_v1, %v1147_v45  ;;  %1325 = vxpose.xlu0.b32.cont [3/16] (narrow) %v1118_v0, 8  ;;  %v1195_v17 = vmul.f32 %v1179_v25, %v1118_v0  ;;  %v3079_v37 = vadd.f32 %v1235_v30, %v1202_v58  ;;  %v1589_v0 = vld [vmem:[%s2349_s23 + $0x108] sm:$0xff] }
 0x248   : > { %v2090_v36 = vpop.eup %2089  ;;  %v1106_v20 = vadd.f32 %v3064_v54, %v1105_v55  ;;  %2109 = vpow2.f32 %v2922_v18  ;;  %v3083_v24 = vmul.f32 %v2858_v16, %v2774_v14  ;;  %v3093_v18 = vadd.f32 %v1237_v10, %v1204_v28  ;;  %v1187_v28 = vld [vmem:[%s2349_s23 + $0x50] sm:$0xff] }
 0x249   : > { %v3085_v1 = vpop.eup %2091  ;;  %v1244_v25 = vadd.f32 %v1228_v44, %v1195_v17  ;;  %v3088_v35 = vmul.f32 %v2090_v36, %v2938_v27  ;;  %v3091_v45 = vmul.f32 %v2090_v36, %v2930_v22  ;;  %v3104_v27 = vmul.f32 %v2841_v8, %v2757_v7  ;;  %v1590_v22 = vld [vmem:[%s2349_s23 + $0x110] sm:$0xff]  ;;  %v1591_v44 = vld [vmem:[%s2349_s23 + $0x118] sm:$0xff] }
 0x24a   : > { %v3096_v55 = vpop.eup %2093  ;;  %2111 = vrcp.f32 %v1106_v20  ;;  %v1107_v14 = vadd.f32 %v3085_v1, %v3070_v19  ;;  %v1275_v16 = vmul.f32 %v1588_v41, %v3083_v24  ;;  %v3114_v58 = vmul.f32 %v2082_v49, %v2910_v61  ;;  %v1582_v8 = vld [vmem:[%s2349_s23 + $0xd0] sm:$0xff] }
 0x24b   : > { %v3107_v30 = vpop.eup %2095  ;;  %1358 = vxpose.xlu1.b32.cont [4/16] (narrow) %v2942_v32, 8  ;;  %1326 = vxpose.xlu0.b32.cont [4/16] (narrow) %v2957_v57, 8  ;;  %v1232_v10 = vmul.f32 %v1578_v47, %v3088_v35  ;;  %v1199_v20 = vmul.f32 %v1183_v31, %v3091_v45  ;;  %v1276_v32 = vmul.f32 %v1589_v0, %v3104_v27 }
 0x24c   : > { %v3117_v17 = vpop.eup %2097  ;;  %v1108_v7 = vadd.f32 %v3096_v55, %v1107_v14  ;;  %v1291_v41 = vadd.f32 %v1275_v16, %v2952_v9  ;;  %v3126_v57 = vmul.f32 %v2872_v15, %v2789_v53  ;;  %v1277_v9 = vmul.f32 %v1590_v22, %v3114_v58 }
 0x24d   : > { %v3128_v47 = vpop.eup %2099  ;;  %v1248_v31 = vadd.f32 %v1232_v10, %v1199_v20  ;;  %v3132_v61 = vmul.f32 %v3117_v17, %v2972_v56  ;;  %v3136_v49 = vmul.f32 %v3117_v17, %v2960_v51  ;;  %v1292_v15 = vadd.f32 %v1276_v32, %v2964_v12  ;;  %v1593_v20 = vld [vmem:[%s2349_s23 + $0x128] sm:$0xff]  ;;  %v1576_v32 = vld [vmem:[%s2349_s23 + $0xa0] sm:$0xff] }
 0x24e   : > { %3418 = vst [vmem:[#allocation19_spill] sm:$0xff] %v3126_v57  ;;  %v3139_v0 = vpop.eup %2101  ;;  %2113 = vrcp.f32 %v1108_v7  ;;  %v1111_v53 = vadd.f32 %v3128_v47, %v3107_v30  ;;  %1307 = vst [vmem:[%s3143_s11] sm:$0xff] %v1291_v41  ;;  %v1278_v51 = vmul.f32 %v1591_v44, %v3126_v57  ;;  %v1293_v22 = vadd.f32 %v1277_v9, %v1244_v25  ;;  %v1594_v7 = vld [vmem:[%s2349_s23 + $0x130] sm:$0xff]  ;;  %v1181_v44 = vld [vmem:[%s2349_s23 + $0x20] sm:$0xff] }
 0x24f   : > { %v3148_v56 = vpop.eup %2103  ;;  %v1236_v14 = vmul.f32 %v1582_v8, %v3132_v61  ;;  %v1203_v16 = vmul.f32 %v1187_v28, %v3136_v49  ;;  %v3154_v10 = vmul.f32 %v2920_v50, %v2831_v39  ;;  %1308 = vst [vmem:[%s3143_s11 + $0x8] sm:$0xff] %v1292_v15  ;;  %v1592_v57 = vld [vmem:[%s2349_s23 + $0x120] sm:$0xff]  ;;  %v3165_v25 = vmul.f32 %v2090_v36, %v2944_v13 }
 0x250   : > { %v2106_v41 = vpop.eup %2105  ;;  %v1112_v12 = vadd.f32 %v3139_v0, %v1111_v53  ;;  %v1294_v8 = vadd.f32 %v1278_v51, %v2997_v62  ;;  %v3169_v39 = vmul.f32 %v3002_v4, %v2883_v11  ;;  %1309 = vst [vmem:[%s3143_s11 + $0x10] sm:$0xff] %v1293_v22  ;;  %v1595_v62 = vld [vmem:[%s2349_s23 + $0x138] sm:$0xff]  ;;  %v1189_v22 = vld [vmem:[%s2349_s23 + $0x60] sm:$0xff] }
 0x251   : > { %v3171_v50 = vpop.eup %2107  ;;  %v1149_v28 = vmul.f32 %v2106_v41, %v3013_v42  ;;  %v1122_v9 = vmul.f32 %v2106_v41, %v2994_v63  ;;  %v1252_v53 = vadd.f32 %v1236_v14, %v1203_v16  ;;  %v3177_v15 = vmul.f32 %v2106_v41, %v3026_v60  ;;  %v1584_v16 = vld [vmem:[%s2349_s23 + $0xe0] sm:$0xff] }
 0x252   : > { %v3180_v13 = vpop.eup %2109  ;;  %2115 = vrcp.f32 %v1112_v12  ;;  %v1109_v11 = vadd.f32 %v3171_v50, %v3148_v56  ;;  %1310 = vst [vmem:[%s3143_s11 + $0x18] sm:$0xff] %v1294_v8  ;;  %v1280_v4 = vmul.f32 %v1593_v20, %v3154_v10  ;;  %v1281_v42 = vmul.f32 %v1594_v7, %v3165_v25  ;;  %v1596_v8 = vld [vmem:[%s2349_s23 + $0x140] sm:$0xff] }
 0x253   : > { %1359 = vxpose.xlu1.b32.cont [5/16] (narrow) %v1149_v28, 8  ;;  %v1230_v63 = vmul.f32 %v1576_v32, %v1149_v28  ;;  %1327 = vxpose.xlu0.b32.cont [5/16] (narrow) %v1122_v9, 8  ;;  %v1197_v60 = vmul.f32 %v1181_v44, %v1122_v9  ;;  %v1279_v36 = vmul.f32 %v1592_v57, %v3177_v15  ;;  %v1597_v28 = vld [vmem:[%s2349_s23 + $0x148] sm:$0xff] }
 0x254   : > { %v2112_v51 = vpop.eup %2111  ;;  %v1110_v14 = vadd.f32 %v3180_v13, %v1109_v11  ;;  %v1296_v20 = vadd.f32 %v1280_v4, %v3016_v2  ;;  %v1297_v41 = vadd.f32 %v1281_v42, %v1248_v31  ;;  %v1282_v7 = vmul.f32 %v1595_v62, %v3169_v39  ;;  %v1598_v2 = vld [vmem:[%s2349_s23 + $0x150] sm:$0xff]  ;;  %v1585_v11 = vld [vmem:[%s2349_s23 + $0xe8] sm:$0xff] }
 0x255   : > { %v1246_v12 = vadd.f32 %v1230_v63, %v1197_v60  ;;  %v3194_v32 = vmul.f32 %v2112_v51, %v3057_v43  ;;  %v3197_v44 = vmul.f32 %v2112_v51, %v3033_v21  ;;  %v3201_v57 = vmul.f32 %v2891_v3, %v2813_v34 }
 0x256   : > { %2117 = vrcp.f32 %v1110_v14  ;;  %1312 = vst [vmem:[%s3143_s11 + $0x28] sm:$0xff] %v1296_v20  ;;  %1313 = vst [vmem:[%s3143_s11 + $0x30] sm:$0xff] %v1297_v41  ;;  %v1298_v43 = vadd.f32 %v1282_v7, %v3062_v5  ;;  %v3211_v21 = vmul.f32 %v2809_v48, %v2736_v52  ;;  %v3215_v34 = vmul.f32 %v3117_v17, %v2985_v46  ;;  %v1599_v5 = vld [vmem:[%s2349_s23 + $0x158] sm:$0xff]  ;;  %v1190_v52 = vld [vmem:[%s2349_s23 + $0x68] sm:$0xff] }
 0x257   : > { %1360 = vxpose.xlu1.b32.cont [6/16] (narrow) %v2968_v59, 8  ;;  %1328 = vxpose.xlu0.b32.cont [6/16] (narrow) %v2978_v6, 8  ;;  %v1238_v3 = vmul.f32 %v1584_v16, %v3194_v32  ;;  %v1205_v31 = vmul.f32 %v1189_v22, %v3197_v44  ;;  %v1295_v9 = vadd.f32 %v1279_v36, %v1246_v12  ;;  %v1600_v6 = vld [vmem:[%s2349_s23 + $0x160] sm:$0xff]  ;;  %v1587_v22 = vld [vmem:[%s2349_s23 + $0xf8] sm:$0xff] }
 0x258   : > { %v2114_v62 = vpop.eup %2113  ;;  %1314 = vst [vmem:[%s3143_s11 + $0x38] sm:$0xff] %v1298_v43  ;;  %v1283_v48 = vmul.f32 %v1596_v8, %v3201_v57  ;;  %v1284_v46 = vmul.f32 %v1597_v28, %v3211_v21  ;;  %v1285_v17 = vmul.f32 %v1598_v2, %v3215_v34  ;;  %v3230_v59 = vmul.f32 %v2949_v38, %v2863_v29  ;;  %v1603_v28 = vld [vmem:[%s2349_s23 + $0x178] sm:$0xff]  ;;  %v1586_v2 = vld [vmem:[%s2349_s23 + $0xf0] sm:$0xff] }
 0x259   : > { %v1254_v4 = vadd.f32 %v1238_v3, %v1205_v31  ;;  %v3234_v42 = vmul.f32 %v2114_v62, %v3085_v1  ;;  %v3237_v63 = vmul.f32 %v2114_v62, %v3070_v19  ;;  %1311 = vst [vmem:[%s3143_s11 + $0x20] sm:$0xff] %v1295_v9  ;;  %v3241_v60 = vmul.f32 %v2112_v51, %v3064_v54  ;;  %v1601_v51 = vld [vmem:[%s2349_s23 + $0x168] sm:$0xff] }
 0x25a   : > { %v1299_v29 = vadd.f32 %v1283_v48, %v3030_v40  ;;  %v1300_v38 = vadd.f32 %v1284_v46, %v3079_v37  ;;  %v1301_v36 = vadd.f32 %v1285_v17, %v1252_v53  ;;  %v1286_v14 = vmul.f32 %v1599_v5, %v3230_v59  ;;  %v1192_v40 = vld [vmem:[%s2349_s23 + $0x78] sm:$0xff] }
 0x25b   : > { %1361 = vxpose.xlu1.b32.cont [7/16] (narrow) %v3088_v35, 8  ;;  %1329 = vxpose.xlu0.b32.cont [7/16] (narrow) %v3091_v45, 8  ;;  %v1239_v19 = vmul.f32 %v1585_v11, %v3234_v42  ;;  %v1206_v1 = vmul.f32 %v1190_v52, %v3237_v63  ;;  %v1287_v54 = vmul.f32 %v1600_v6, %v3241_v60  ;;  %v3421_v11 = vld [vmem:[#allocation15_spill] sm:$0xff]  ;;  %v3423_v6 = vld [vmem:[#allocation18_spill] sm:$0xff] }
 0x25c   : > { %v2116_v16 = vpop.eup %2115  ;;  %1315 = vst [vmem:[%s3143_s11 + $0x40] sm:$0xff] %v1299_v29  ;;  %1316 = vst [vmem:[%s3143_s11 + $0x48] sm:$0xff] %v1300_v38  ;;  %v1302_v37 = vadd.f32 %v1286_v14, %v3093_v18  ;;  %v3259_v35 = vmul.f32 %v2114_v62, %v3096_v55  ;;  %v3419_v18 = vld [vmem:[#allocation17_spill] sm:$0xff]  ;;  %v3420_v62 = vld [vmem:[#allocation14_spill] sm:$0xff] }
 0x25d   : > { %1317 = vst [vmem:[%s3143_s11 + $0x50] sm:$0xff] %v1301_v36  ;;  %v1255_v45 = vadd.f32 %v1239_v19, %v1206_v1  ;;  %v1160_v53 = vmul.f32 %v2116_v16, %v3128_v47  ;;  %v1144_v20 = vmul.f32 %v2116_v16, %v3107_v30  ;;  %v1303_v41 = vadd.f32 %v1287_v54, %v1254_v4  ;;  %v1191_v30 = vld [vmem:[%s2349_s23 + $0x70] sm:$0xff] }
 0x25e   : > { %1318 = vst [vmem:[%s3143_s11 + $0x58] sm:$0xff] %v1302_v37  ;;  %v1288_v7 = vmul.f32 %v1601_v51, %v3259_v35  ;;  %v3266_v12 = vmul.f32 %v2116_v16, %v3139_v0 }
 0x25f   : > { %1362 = vxpose.xlu1.b32.cont [8/16] (narrow) %v3020_v26, 8  ;;  %1330 = vxpose.xlu0.b32.cont [8/16] (narrow) %v3419_v18, 8  ;;  %v1241_v55 = vmul.f32 %v1587_v22, %v1160_v53  ;;  %v1208_v8 = vmul.f32 %v1192_v40, %v1144_v20  ;;  %1319 = vst [vmem:[%s3143_s11 + $0x60] sm:$0xff] %v1303_v41  ;;  %v1602_v26 = vld [vmem:[%s2349_s23 + $0x170] sm:$0xff]  ;;  %s1611_s23 = sshll.u32 %s2283_s22, 11 }
 0x260   : > { %v2118_v47 = vpop.eup %2117  ;;  %v1304_v43 = vadd.f32 %v1288_v7, %v1255_v45  ;;  %v1290_v5 = vmul.f32 %v1603_v28, %v3266_v12  ;;  %s3302_s16 = scalar_lea.hbm %s3401_s4, %s1611_s23 }
 0x261   : > { %v1159_v3 = vmul.f32 %v2118_v47, %v3171_v50  ;;  %v1142_v31 = vmul.f32 %v2118_v47, %v3148_v56  ;;  %v1257_v0 = vadd.f32 %v1241_v55, %v1208_v8  ;;  %v3277_v9 = vmul.f32 %v2118_v47, %v3180_v13  ;;  %v3422_v56 = vld [vmem:[#allocation16_spill] sm:$0xff] }
 0x262   : > { %1320 = vst [vmem:[%s3143_s11 + $0x68] sm:$0xff] %v1304_v43 }
 0x263   : > { %1363 = vxpose.xlu1.b32.cont [9/16] (narrow) %v3420_v62, 8  ;;  %1331 = vxpose.xlu0.b32.cont [9/16] (narrow) %v3421_v11, 8  ;;  %v1240_v52 = vmul.f32 %v1586_v2, %v1159_v3  ;;  %v1207_v48 = vmul.f32 %v1191_v30, %v1142_v31  ;;  %v1306_v46 = vadd.f32 %v1290_v5, %v1257_v0 }
 0x264   : > { %v1289_v50 = vmul.f32 %v1602_v26, %v3277_v9 }
 0x265   : > { %v1256_v17 = vadd.f32 %v1240_v52, %v1207_v48  ;;  %1322 = vst [vmem:[%s3143_s11 + $0x78] sm:$0xff] %v1306_v46 }
 0x267   : > { %1364 = vxpose.xlu1.b32.cont [10/16] (narrow) %v3422_v56, 8  ;;  %1332 = vxpose.xlu0.b32.cont [10/16] (narrow) %v3040_v33, 8  ;;  %v1305_v13 = vadd.f32 %v1289_v50, %v1256_v17 }
 0x269   : > { %1321 = vst [vmem:[%s3143_s11 + $0x70] sm:$0xff] %v1305_v13 }
 0x26b   : > { %1365 = vxpose.xlu1.b32.cont [11/16] (narrow) %v3132_v61, 8  ;;  %1333 = vxpose.xlu0.b32.cont [11/16] (narrow) %v3136_v49, 8 }
 0x26f   : > { %1366 = vxpose.xlu1.b32.cont [12/16] (narrow) %v3423_v6, 8  ;;  %1334 = vxpose.xlu0.b32.cont [12/16] (narrow) %v3054_v23, 8 }
 0x273   : > { %1367 = vxpose.xlu1.b32.cont [13/16] (narrow) %v3194_v32, 8  ;;  %1335 = vxpose.xlu0.b32.cont [13/16] (narrow) %v3197_v44, 8 }
 0x277   : > { %1368 = vxpose.xlu1.b32.cont [14/16] (narrow) %v3234_v42, 8  ;;  %1336 = vxpose.xlu0.b32.cont [14/16] (narrow) %v3237_v63, 8 }
 0x27b   : > { %1369 = vxpose.xlu1.b32.cont [15/16] (narrow) %v1159_v3, 8  ;;  %1337 = vxpose.xlu0.b32.cont [15/16] (narrow) %v1142_v31, 8 }
 0x27f   : > { %1370 = vxpose.xlu1.b32.end [16/16] (narrow) %v1160_v53, 8  ;;  %1338 = vxpose.xlu0.b32.end [16/16] (narrow) %v1144_v20, 8 }
 0x283   : > { %1387 = vxpose.xlu0.b32.start [1/16] (narrow) %v3083_v24, 8 }
 0x287   : > { %1388 = vxpose.xlu0.b32.cont [2/16] (narrow) %v3104_v27, 8 }
 0x288   : > { %2132 = shalt.err (!%p2129_p7)
}
 0x289   : > { %s2133_s26 = scalar_lea.hbm %s3302_s16, 2048  ;;  %s2137_s29 = scalar_lea.hbm %s3401_s4, 4096 }
 0x28a   : > { %p2134_p8 = scmp.ne.s32.totalorder %s3302_s16, %s2133_s26  ;;  %p2138_p0 = scmp.lt.u32.totalorder %s3302_s16, %s3401_s4 }
 0x28b   : > { %p2139_p1 = scmp.lt.u32.totalorder %s2137_s29, %s2133_s26  ;;  %p2141_p3 = scmp.lt.u32.totalorder %s2133_s26, %s3302_s16 }
 0x28c   : > { %p2135_p12 = pnand %p2134_p8, %p2310_p9 }
 0x28d   : > { %p2140_p2 = por %p2139_p1, %p2138_p0 }
 0x28e   : > { %p2136_p13 = pneg %p2135_p12 }
 0x28f   : > { %p2142_p4 = por %p2141_p3, %p2140_p2 }
 0x291   : > { %p2143_p5 = pnand %p2142_p4, %p2136_p13 }
 0x293   : > { %2146 = shalt.err (!%p2143_p5)
}
 0x294   : > { %s2226_s8 = smov 128   ;;  %s2227_s12 = smov 8   ;;  %1389 = vxpose.xlu0.b32.cont [3/16] (narrow) %v3114_v58, 8  ;;  %v3424_v33 = vld [vmem:[#allocation19_spill] sm:$0xff] }
 0x295   : > { %1840 = dma.vmem_to_hbm [thread:$0]  (%p2310_p9), %s3305_s15, 2048, %s3302_s16, %s1423_s28, %s2226_s8, %s2226_s8, %s2227_s12  }
 0x296   : > { %s1830_s16 = smul.u32 3, %s2345_s13  ;;  %s1607_s7 = sshll.u32 %s2283_s22, 4 }
 0x297   : > { %s3353_s25 = scalar_lea.hbm %s3402_s5, %s1607_s7  ;;  %s1428_s26 = scalar_lea.sflag [#allocation7], %s2345_s13 }
 0x298   : > { %1390 = vxpose.xlu0.b32.cont [4/16] (narrow) %v3424_v33, 8  ;;  %s278_s15 = scalar_lea.vmem [#allocation6], %s1830_s16  ;;  %s2228_s9 = smov [#allocation6]  }
 0x299   : > { %s1456_s28 = sshll.u32 %s278_s15, 4  ;;  %s2151_s22 = sshll.u32 %s2228_s9, 4  ;;  %s3348_s28 = int_to_ptr.vmem [resolvable:$true] %s1456_s28  ;;  %s2152_s22 = int_to_ptr.vmem [resolvable:$false] %s2151_s22 }
 0x29a   : > { %s2147_s10 = scalar_lea.vmem %s3348_s28, 48  ;;  %s2153_s29 = scalar_lea.vmem %s2152_s22, 96 }
 0x29b   : > { %p2148_p6 = scmp.ne.s32.totalorder %s3348_s28, %s2147_s10  ;;  %p2154_p12 = scmp.lt.s32.totalorder %s3348_s28, %s2152_s22 }
 0x29c   : > { %1391 = vxpose.xlu0.b32.cont [5/16] (narrow) %v3177_v15, 8  ;;  %p2155_p13 = scmp.lt.s32.totalorder %s2153_s29, %s2147_s10 }
 0x29d   : > { %p2149_p7 = pnand %p2148_p6, %p2310_p9 }
 0x29e   : > { %p2156_p0 = por %p2155_p13, %p2154_p12 }
 0x29f   : > { %p2150_p8 = pneg %p2149_p7 }
 0x2a0   : > { %1392 = vxpose.xlu0.b32.cont [6/16] (narrow) %v3154_v10, 8 }
 0x2a1   : > { %p2157_p1 = pnand %p2156_p0, %p2150_p8 }
 0x2a4   : > { %1393 = vxpose.xlu0.b32.cont [7/16] (narrow) %v3165_v25, 8 }
 0x2a8   : > { %1394 = vxpose.xlu0.b32.cont [8/16] (narrow) %v3169_v39, 8 }
 0x2ac   : > { %1395 = vxpose.xlu0.b32.cont [9/16] (narrow) %v3201_v57, 8 }
 0x2b0   : > { %1396 = vxpose.xlu0.b32.cont [10/16] (narrow) %v3211_v21, 8 }
 0x2b4   : > { %1397 = vxpose.xlu0.b32.cont [11/16] (narrow) %v3215_v34, 8 }
 0x2b8   : > { %1398 = vxpose.xlu0.b32.cont [12/16] (narrow) %v3230_v59, 8 }
 0x2bc   : > { %1399 = vxpose.xlu0.b32.cont [13/16] (narrow) %v3241_v60, 8 }
 0x2c0   : > { %1400 = vxpose.xlu0.b32.cont [14/16] (narrow) %v3259_v35, 8 }
 0x2c3   : > { %v1339_v23 = vpop.trf.xlu0  ;;  %v1371_v24 = vpop.trf.xlu1 }
 0x2c4   : > { %1401 = vxpose.xlu0.b32.cont [15/16] (narrow) %v3277_v9, 8  ;;  %1419 = vst [vmem:[%s278_s15] sm:$0x1] %v1339_v23  ;;  %1420 = vst [vmem:[%s278_s15 + $0x1] sm:$0x1] %v1371_v24 }
 0x2c8   : > { %1402 = vxpose.xlu0.b32.end [16/16] (narrow) %v3266_v12, 8 }
 0x30c   : > { %v1403_v27 = vpop.trf.xlu0 }
 0x30d   : > { %1421 = vst [vmem:[%s278_s15 + $0x2] sm:$0x1] %v1403_v27 }
 0x30e   : > { %2160 = shalt.err (!%p2157_p1)
}
 0x30f   : > { %s2161_s11 = scalar_lea.hbm %s3353_s25, 48  ;;  %s2165_s12 = scalar_lea.hbm %s3402_s5, 96 }
 0x310   : > { %p2162_p2 = scmp.ne.s32.totalorder %s3353_s25, %s2161_s11  ;;  %p2166_p5 = scmp.lt.u32.totalorder %s3353_s25, %s3402_s5 }
 0x311   : > { %p2167_p6 = scmp.lt.u32.totalorder %s2165_s12, %s2161_s11  ;;  %p2169_p8 = scmp.lt.u32.totalorder %s2161_s11, %s3353_s25 }
 0x312   : > { %p2163_p3 = pnand %p2162_p2, %p2310_p9 }
 0x313   : > { %p2168_p7 = por %p2167_p6, %p2166_p5 }
 0x314   : > { %p2164_p4 = pneg %p2163_p3 }
 0x315   : > { %p2170_p12 = por %p2169_p8, %p2168_p7 }
 0x317   : > { %p2171_p13 = pnand %p2170_p12, %p2164_p4 }
 0x319   : > { %2174 = shalt.err (!%p2171_p13)
}
 0x31a   : > { %s2229_s7 = smov 16   ;;  %s2230_s14 = smov 32  }
 0x31b   : > { %s2231_s17 = smov 1  }
 0x31c   : > { %1841 = dma.vmem_to_hbm [thread:$0]  (%p2310_p9), %s3348_s28, 48, %s3353_s25, %s1428_s26, %s2229_s7, %s2230_s14, %s2231_s17  }
 0x31d PF: > { %s1471_s10 = sand.u32 1, %s2205_s18   ;;  %p1845_p0 = pnand %p1563_p11, %p2314_p10 }
 0x31e   : > { %s1472_s9 = scalar_lea.sflag [#allocation4], %s1471_s10 }
 0x31f   : > { %2196 = dma.done.wait (!%p1845_p0), %s1472_s9, 2048  }
 0x320   : > { %2198 = vsyncadd (!%p1845_p0), %s1472_s9, 4294965248  ;;  %s1481_s22 = scalar_lea.sflag [#allocation7], %s1471_s10 }
 0x321   : > { %2200 = dma.done.wait (!%p1845_p0), %s1481_s22, 48  }
 0x322   : > { %2202 = vsyncadd (!%p1845_p0), %s1481_s22, 4294967248  ;;  %p22_p9 = scmp.ge.s32.totalorder %s2287_s24, 4   ;;  %s3425_s18 = smov %s2209_s19 }
 0x323   : > { %s3426_s19 = smov %s2213_s20  ;;  %s3427_s20 = smov %s2299_s27 }
 0x324   : > { %s3428_s21 = smov %s2287_s24  ;;  %24 = sbr.rel (!%p22_p9) target bundleno = 7 (0x7), region = 105 }
 0x32b   :  { %1486 = vsyncpa [#allocation3], 1 }
 0x32c   :  { %1488 = vsyncpa [#allocation3 + $0x1], 1 }
 0x32d   :  { %1489 = vsyncpa [#allocation4], 1 }
 0x32e   :  { %1491 = vsyncpa [#allocation4 + $0x1], 1 }
 0x32f   :  { %1492 = vsyncpa [#allocation7], 1 }
 0x330   :  { %1494 = vsyncpa [#allocation7 + $0x1], 1 }

</bundles_post_ra>
